<compile_context>
chip_gen: v6e
topology: v6e:2x2x1
jax: 0.10.0
libtpu: 0.0.40
codegen_flags: <defaults>
</compile_context>

<pallas_src>
import jax
import jax.numpy as jnp
from jax.experimental import pallas as pl
from jax.experimental.pallas import tpu as pltpu


# Per-block M tile (lane width of every GEMM/elementwise store). Capped at 2048
# for v7x's 64 MiB VMEM (double-buffered bf16 patches block is K*tm*2B*2);
# v5e/v6e (128 MiB VMEM) could use 4096.
_TM_MAX = 2048
_BN_EPS = 1e-5


def _round_up(x, m):
    return ((x + m - 1) // m) * m


# ----------------------------------------------------------------------------
# Pallas kernels
# ----------------------------------------------------------------------------
def _deconv_bn_gemm_kernel(w_ref, p_ref, y_ref, s_ref):
    """(Co,K)bf16 @ (K,tm)bf16 -> (Co,tm)f32 + fused per-channel BN partial stats."""
    acc = jnp.dot(w_ref[0], p_ref[0], preferred_element_type=jnp.float32)
    y_ref[0] = acc
    # Fused BatchNorm statistics: per-channel partial sum / sum-of-squares of
    # this block (lane reduction on the XLU while the MXU runs).
    ssum = jnp.sum(acc, axis=1, keepdims=True)          # (Co, 1)
    ssq = jnp.sum(acc * acc, axis=1, keepdims=True)     # (Co, 1)
    col = jax.lax.broadcasted_iota(jnp.int32, (acc.shape[0], 8), 1)
    s_ref[0, 0] = jnp.where(col == 0, ssum, jnp.where(col == 1, ssq, 0.0))


def _deconv_tanh_gemm_kernel(w_ref, p_ref, y_ref):
    """Final layer: GEMM with tanh fused into the epilogue (no BatchNorm)."""
    acc = jnp.dot(w_ref[0], p_ref[0], preferred_element_type=jnp.float32)
    y_ref[0] = jnp.tanh(acc)


def _affine_relu_kernel(y_ref, sc_ref, sh_ref, o_ref):
    """Lane-dense fused BatchNorm normalize (per-channel affine) + ReLU."""
    o_ref[0] = jnp.maximum(y_ref[0] * sc_ref[...] + sh_ref[...], 0.0)


# ----------------------------------------------------------------------------
# Glue: parity weights / patches (cheap XLA slices, no transposes of activations)
# ----------------------------------------------------------------------------
def _parity_weights(w):
    """w: PyTorch ConvTranspose2d weight (Ci, Co, 4, 4) -> (4, Co, 4*Ci).

    Parity (rh, rw), tap (dh, dw) uses kernel element (3-rh-2*dh, 3-rw-2*dw).
    K ordering = tap-major, ci-minor (matches _parity_patches).
    """
    Ci, Co = w.shape[0], w.shape[1]
    planes = []
    for rh in range(2):
        for rw in range(2):
            taps = [w[:, :, 3 - rh - 2 * dh, 3 - rw - 2 * dw]
                    for dh in range(2) for dw in range(2)]        # each (Ci, Co)
            wk = jnp.stack(taps, axis=0)                          # (4, Ci, Co)
            planes.append(wk.transpose(2, 0, 1).reshape(Co, 4 * Ci))
    return jnp.stack(planes, axis=0)                              # (4, Co, K)


def _parity_patches(h_cf, Mp):
    """h_cf: activation (Ci, N, H, W) -> per-parity patch matrices (4, 4*Ci, Mp).

    Only 4 shifted 2x2-tap windows per parity (structural zeros of the
    zero-stuffed deconv are never materialized). No transposes: channels are
    already outermost, so window-slice + reshape is a contiguous merge.
    """
    Ci, N, H, W = h_cf.shape
    M = N * H * W
    xp = jnp.pad(h_cf, ((0, 0), (0, 0), (1, 1), (1, 1)))
    planes = []
    for rh in range(2):
        for rw in range(2):
            wins = [xp[:, :, rh + dh:rh + dh + H, rw + dw:rw + dw + W]
                    for dh in range(2) for dw in range(2)]        # each (Ci,N,H,W)
            planes.append(jnp.stack(wins, axis=0).reshape(4 * Ci, M))
    pat = jnp.stack(planes, axis=0)                               # (4, K, M)
    if Mp > M:
        pat = jnp.pad(pat, ((0, 0), (0, 0), (0, Mp - M)))
    return pat


# ----------------------------------------------------------------------------
# Layer: ConvTranspose2d(Ci,Co,4,2,1,bias=False) [+ BN(train) + ReLU | + Tanh]
# ----------------------------------------------------------------------------
def deconv_s2_block(h_cf, w, gamma=None, beta=None, *, final_tanh=False,
                    eps=_BN_EPS):
    """h_cf: (Ci, N, H, W) channel-outermost -> (Co, N, 2H, 2W)."""
    Ci, N, H, W = h_cf.shape
    Co = w.shape[1]
    K = 4 * Ci
    M = N * H * W
    tm = min(_TM_MAX, _round_up(M, 128))      # lane-dense: tile is a multiple of 128
    Mp = _round_up(M, tm)
    n_m = Mp // tm

    wp = _parity_weights(w).astype(jnp.bfloat16)            # (4, Co, K)
    pats = _parity_patches(h_cf, Mp).astype(jnp.bfloat16)   # (4, K, Mp)

    w_spec = pl.BlockSpec((1, Co, K), lambda p, j: (p, 0, 0))
    p_spec = pl.BlockSpec((1, K, tm), lambda p, j: (p, 0, j))
    y_spec = pl.BlockSpec((1, Co, tm), lambda p, j: (p, 0, j))
    cparams = pltpu.CompilerParams(
        dimension_semantics=("parallel", "parallel"))

    if final_tanh:
        y = pl.pallas_call(
            _deconv_tanh_gemm_kernel,
            out_shape=jax.ShapeDtypeStruct((4, Co, Mp), jnp.float32),
            grid=(4, n_m),
            in_specs=[w_spec, p_spec],
            out_specs=y_spec,
            compiler_params=cparams,
        )(wp, pats)
    else:
        y_raw, stats = pl.pallas_call(
            _deconv_bn_gemm_kernel,
            out_shape=(jax.ShapeDtypeStruct((4, Co, Mp), jnp.float32),
                       jax.ShapeDtypeStruct((4, n_m, Co, 8), jnp.float32)),
            grid=(4, n_m),
            in_specs=[w_spec, p_spec],
            out_specs=(y_spec,
                       pl.BlockSpec((1, 1, Co, 8), lambda p, j: (p, j, 0, 0))),
            compiler_params=cparams,
        )(wp, pats)
        # BatchNorm (training mode, biased variance) from the fused per-block
        # partial sums (zero-padded M columns contribute 0; count uses true M).
        # NOTE: E[x^2]-mean^2 in f32 from f32-accumulated sums; clamped at 0.
        cnt = jnp.float32(4 * M)                  # N*OH*OW elements per channel
        ssum = stats[..., 0].sum(axis=(0, 1))
        ssq = stats[..., 1].sum(axis=(0, 1))
        mean = ssum / cnt
        var = jnp.maximum(ssq / cnt - mean * mean, 0.0)
        scale = gamma * jax.lax.rsqrt(var + eps)
        shift = beta - mean * scale
        y = pl.pallas_call(
            _affine_relu_kernel,
            out_shape=jax.ShapeDtypeStruct((4, Co, Mp), jnp.float32),
            grid=(4, n_m),
            in_specs=[y_spec,
                      pl.BlockSpec((Co, 1), lambda p, j: (0, 0)),
                      pl.BlockSpec((Co, 1), lambda p, j: (0, 0))],
            out_specs=y_spec,
            compiler_params=cparams,
        )(y_raw, scale.reshape(Co, 1).astype(jnp.float32),
          shift.reshape(Co, 1).astype(jnp.float32))

    # Pixel-shuffle the 4 parity planes back to full resolution (cheap glue).
    y = y[:, :, :M].reshape(2, 2, Co, N, H, W)
    y = y.transpose(2, 3, 4, 0, 5, 1).reshape(Co, N, 2 * H, 2 * W)
    return y


def first_deconv_bn_relu(x_nchw, w0, gamma, beta, *, eps=_BN_EPS):
    """ConvT(enc, 8g, k=4, s=1, p=0) on 1x1 input + BN + ReLU, in plain JAX.

    Per perf review: ~32K MACs — a Pallas launch (and its masked Co-wide
    stores) is pure overhead here.
    """
    N, Ci = x_nchw.shape[0], x_nchw.shape[1]
    x2 = x_nchw.reshape(N, Ci).astype(jnp.float32)
    y = jnp.einsum('nc,cohw->onhw', x2, w0)          # (Co, N, kH, kW)
    mean = y.mean(axis=(1, 2, 3), keepdims=True)
    var = ((y - mean) ** 2).mean(axis=(1, 2, 3), keepdims=True)
    yn = (y - mean) * jax.lax.rsqrt(var + eps)
    yn = yn * gamma.reshape(-1, 1, 1, 1) + beta.reshape(-1, 1, 1, 1)
    return jnp.maximum(yn, 0.0)                      # channel-outermost layout


# ----------------------------------------------------------------------------
# Full forward
# ----------------------------------------------------------------------------
def deconv_decoder_forward(x, params):
    """x: (N, enc_size, 1, 1) NCHW -> (N, n_channels, 64, 64) NCHW."""
    # block 0: ConvT(enc, 8g, 4, 1, 0) + BN + ReLU (plain JAX, tiny)
    h = first_deconv_bn_relu(x, params["w0"], params["g0"], params["b0"])
    # blocks 1..3: ConvT(.., 4, 2, 1) + BN + ReLU (Pallas GEMM + fused stats + affine/ReLU)
    for i in (1, 2, 3):
        h = deconv_s2_block(h, params[f"w{i}"], params[f"g{i}"], params[f"b{i}"])
    # final block: ConvT(g, n_channels, 4, 2, 1) + Tanh fused into GEMM epilogue
    y = deconv_s2_block(h, params["w4"], final_tanh=True)
    # layout conversion only at the module boundary: (C, N, H, W) -> NCHW
    return y.transpose(1, 0, 2, 3)


def init_params(key, enc_size, ngf, n_channels):
    chans = [enc_size, ngf * 8, ngf * 4, ngf * 2, ngf, n_channels]
    params = {}
    keys = jax.random.split(key, 5)
    for i in range(5):
        ci, co = chans[i], chans[i + 1]
        # PyTorch ConvTranspose2d weight layout: (in_channels, out_channels, kH, kW)
        params[f"w{i}"] = 0.05 * jax.random.normal(keys[i], (ci, co, 4, 4), jnp.float32)
        if i < 4:  # BatchNorm affine params (default init: gamma=1, beta=0)
            params[f"g{i}"] = jnp.ones((co,), jnp.float32)
            params[f"b{i}"] = jnp.zeros((co,), jnp.float32)
    return params


if __name__ == "__main__":
    N, ENC, NGF, NCH = 2, 16, 8, 3
    key = jax.random.PRNGKey(0)
    kx, kp = jax.random.split(key)
    x = jax.random.normal(kx, (N, ENC, 1, 1), jnp.float32)  # latent code, NCHW
    params = init_params(kp, ENC, NGF, NCH)

    out = jax.jit(deconv_decoder_forward)(x, params)
    out = jax.block_until_ready(out)

    assert out.shape == (N, NCH, 64, 64), out.shape
    assert bool(jnp.all(jnp.isfinite(out)))
    assert bool(jnp.all(jnp.abs(out) <= 1.0 + 1e-6))  # tanh range
    print("KERNEL_OK")
</pallas_src>

<mosaic_0001>
module attributes {stable_mosaic.version = 11 : i64} {
  func.func @_deconv_bn_gemm_kernel(%arg0: i32, %arg1: i32, %arg2: memref<1x32x256xbf16, #tpu.memory_space<vmem>>, %arg3: memref<1x256x128xbf16, #tpu.memory_space<vmem>>, %arg4: memref<1x32x128xf32, #tpu.memory_space<vmem>>, %arg5: memref<1x1x32x8xf32, #tpu.memory_space<vmem>>) attributes {dimension_semantics = [#tpu.dimension_semantics<parallel>, #tpu.dimension_semantics<parallel>], iteration_bounds = array<i64: 4, 1>, scalar_prefetch = 0 : i64, scratch_operands = 0 : i64, tpu.core_type = #tpu.core_type<tc>, window_params = [{transform_indices = @transform_0, window_bounds = array<i64: 1, 32, 256>}, {transform_indices = @transform_1, window_bounds = array<i64: 1, 256, 128>}, {transform_indices = @transform_2, window_bounds = array<i64: 1, 32, 128>}, {transform_indices = @transform_3, window_bounds = array<i64: 1, 1, 32, 8>}]} {
    %c0 = arith.constant 0 : index
    %c0_0 = arith.constant 0 : index
    %c0_1 = arith.constant 0 : index
    %0 = vector.load %arg2[%c0, %c0_0, %c0_1] : memref<1x32x256xbf16, #tpu.memory_space<vmem>>, vector<1x32x256xbf16>
    %1 = vector.shape_cast %0 : vector<1x32x256xbf16> to vector<32x256xbf16>
    %c0_2 = arith.constant 0 : index
    %c0_3 = arith.constant 0 : index
    %c0_4 = arith.constant 0 : index
    %2 = vector.load %arg3[%c0_2, %c0_3, %c0_4] : memref<1x256x128xbf16, #tpu.memory_space<vmem>>, vector<1x256x128xbf16>
    %3 = vector.shape_cast %2 : vector<1x256x128xbf16> to vector<256x128xbf16>
    %cst = arith.constant dense<0.000000e+00> : vector<32x128xf32>
    %4 = tpu.matmul %1, %3, %cst {dimension_numbers = #tpu.dot_dimension_numbers<[1], [0], [0], [1], [0, 0, 1, 1], [], []>} : vector<32x256xbf16>, vector<256x128xbf16>, vector<32x128xf32> -> vector<32x128xf32>
    %c0_5 = arith.constant 0 : index
    %c0_6 = arith.constant 0 : index
    %c0_7 = arith.constant 0 : index
    %5 = vector.load %arg4[%c0_5, %c0_6, %c0_7] : memref<1x32x128xf32, #tpu.memory_space<vmem>>, vector<1x32x128xf32>
    %6 = vector.shape_cast %5 : vector<1x32x128xf32> to vector<32x128xf32>
    %7 = vector.shape_cast %4 : vector<32x128xf32> to vector<1x32x128xf32>
    tpu.vector_store %arg4[%c0_5, %c0_6, %c0_7], %7 {strides = array<i32>} : memref<1x32x128xf32, #tpu.memory_space<vmem>>, vector<1x32x128xf32>,
    %cst_8 = arith.constant dense<0.000000e+00> : vector<32xf32>
    %8 = vector.multi_reduction <add>, %4, %cst_8 [1] : vector<32x128xf32> to vector<32xf32>
    %9 = vector.shape_cast %8 : vector<32xf32> to vector<32x1xf32>
    %10 = arith.mulf %4, %4 : vector<32x128xf32>
    %cst_9 = arith.constant dense<0.000000e+00> : vector<32xf32>
    %11 = vector.multi_reduction <add>, %10, %cst_9 [1] : vector<32x128xf32> to vector<32xf32>
    %12 = vector.shape_cast %11 : vector<32xf32> to vector<32x1xf32>
    %13 = tpu.iota {dimensions = array<i32: 1>} : vector<32x8xi32>
    %c0_i32 = arith.constant 0 : i32
    %14 = vector.broadcast %c0_i32 : i32 to vector<32x8xi32>
    %15 = arith.cmpi eq, %13, %14 : vector<32x8xi32>
    %c1_i32 = arith.constant 1 : i32
    %16 = vector.broadcast %c1_i32 : i32 to vector<32x8xi32>
    %17 = arith.cmpi eq, %13, %16 : vector<32x8xi32>
    %cst_10 = arith.constant 0.000000e+00 : f32
    %18 = vector.shape_cast %12 : vector<32x1xf32> to vector<32x1xf32>
    %19 = vector.broadcast %18 : vector<32x1xf32> to vector<32x8xf32>
    %20 = vector.broadcast %cst_10 : f32 to vector<32x8xf32>
    %21 = arith.select %17, %19, %20 : vector<32x8xi1>, vector<32x8xf32>
    %22 = vector.shape_cast %9 : vector<32x1xf32> to vector<32x1xf32>
    %23 = vector.broadcast %22 : vector<32x1xf32> to vector<32x8xf32>
    %24 = arith.select %15, %23, %21 : vector<32x8xi1>, vector<32x8xf32>
    %c0_11 = arith.constant 0 : index
    %c0_12 = arith.constant 0 : index
    %c0_13 = arith.constant 0 : index
    %c0_14 = arith.constant 0 : index
    %25 = vector.load %arg5[%c0_11, %c0_12, %c0_13, %c0_14] : memref<1x1x32x8xf32, #tpu.memory_space<vmem>>, vector<1x1x32x8xf32>
    %26 = vector.shape_cast %25 : vector<1x1x32x8xf32> to vector<32x8xf32>
    %27 = vector.shape_cast %24 : vector<32x8xf32> to vector<1x1x32x8xf32>
    tpu.vector_store %arg5[%c0_11, %c0_12, %c0_13, %c0_14], %27 {strides = array<i32>} : memref<1x1x32x8xf32, #tpu.memory_space<vmem>>, vector<1x1x32x8xf32>,
    return
  }
  func.func @transform_0(%arg0: i32, %arg1: i32) -> (i32, i32, i32) {
    %c0_i32 = arith.constant 0 : i32
    %c0_i32_0 = arith.constant 0 : i32
    %c0_i32_1 = arith.constant 0 : i32
    return %arg0, %c0_i32, %c0_i32_0 : i32, i32, i32
  }
  func.func @transform_1(%arg0: i32, %arg1: i32) -> (i32, i32, i32) {
    %c0_i32 = arith.constant 0 : i32
    %c0_i32_0 = arith.constant 0 : i32
    return %arg0, %c0_i32, %arg1 : i32, i32, i32
  }
  func.func @transform_2(%arg0: i32, %arg1: i32) -> (i32, i32, i32) {
    %c0_i32 = arith.constant 0 : i32
    %c0_i32_0 = arith.constant 0 : i32
    return %arg0, %c0_i32, %arg1 : i32, i32, i32
  }
  func.func @transform_3(%arg0: i32, %arg1: i32) -> (i32, i32, i32, i32) {
    %c0_i32 = arith.constant 0 : i32
    %c0_i32_0 = arith.constant 0 : i32
    %c0_i32_1 = arith.constant 0 : i32
    return %arg0, %arg1, %c0_i32, %c0_i32_0 : i32, i32, i32, i32
  }
}

module attributes {stable_mosaic.version = 11 : i64} {
  func.func @_affine_relu_kernel(%arg0: i32, %arg1: i32, %arg2: memref<1x32x128xf32, #tpu.memory_space<vmem>>, %arg3: memref<32x1xf32, #tpu.memory_space<vmem>>, %arg4: memref<32x1xf32, #tpu.memory_space<vmem>>, %arg5: memref<1x32x128xf32, #tpu.memory_space<vmem>>) attributes {dimension_semantics = [#tpu.dimension_semantics<parallel>, #tpu.dimension_semantics<parallel>], iteration_bounds = array<i64: 4, 1>, scalar_prefetch = 0 : i64, scratch_operands = 0 : i64, tpu.core_type = #tpu.core_type<tc>, window_params = [{transform_indices = @transform_0, window_bounds = array<i64: 1, 32, 128>}, {pipeline_mode = #tpu.pipeline_mode<synchronous>, transform_indices = @transform_1, window_bounds = array<i64: 32, 1>}, {pipeline_mode = #tpu.pipeline_mode<synchronous>, transform_indices = @transform_2, window_bounds = array<i64: 32, 1>}, {transform_indices = @transform_3, window_bounds = array<i64: 1, 32, 128>}]} {
    %c0 = arith.constant 0 : index
    %c0_0 = arith.constant 0 : index
    %c0_1 = arith.constant 0 : index
    %0 = vector.load %arg2[%c0, %c0_0, %c0_1] : memref<1x32x128xf32, #tpu.memory_space<vmem>>, vector<1x32x128xf32>
    %1 = vector.shape_cast %0 : vector<1x32x128xf32> to vector<32x128xf32>
    %c0_2 = arith.constant 0 : index
    %c0_3 = arith.constant 0 : index
    %2 = vector.load %arg3[%c0_2, %c0_3] : memref<32x1xf32, #tpu.memory_space<vmem>>, vector<32x1xf32>
    %3 = vector.broadcast %2 : vector<32x1xf32> to vector<32x128xf32>
    %4 = arith.mulf %1, %3 : vector<32x128xf32>
    %c0_4 = arith.constant 0 : index
    %c0_5 = arith.constant 0 : index
    %5 = vector.load %arg4[%c0_4, %c0_5] : memref<32x1xf32, #tpu.memory_space<vmem>>, vector<32x1xf32>
    %6 = vector.broadcast %5 : vector<32x1xf32> to vector<32x128xf32>
    %7 = arith.addf %4, %6 : vector<32x128xf32>
    %cst = arith.constant 0.000000e+00 : f32
    %8 = vector.broadcast %cst : f32 to vector<32x128xf32>
    %9 = arith.maximumf %7, %8 : vector<32x128xf32>
    %c0_6 = arith.constant 0 : index
    %c0_7 = arith.constant 0 : index
    %c0_8 = arith.constant 0 : index
    %10 = vector.load %arg5[%c0_6, %c0_7, %c0_8] : memref<1x32x128xf32, #tpu.memory_space<vmem>>, vector<1x32x128xf32>
    %11 = vector.shape_cast %10 : vector<1x32x128xf32> to vector<32x128xf32>
    %12 = vector.shape_cast %9 : vector<32x128xf32> to vector<1x32x128xf32>
    tpu.vector_store %arg5[%c0_6, %c0_7, %c0_8], %12 {strides = array<i32>} : memref<1x32x128xf32, #tpu.memory_space<vmem>>, vector<1x32x128xf32>,
    return
  }
  func.func @transform_0(%arg0: i32, %arg1: i32) -> (i32, i32, i32) {
    %c0_i32 = arith.constant 0 : i32
    %c0_i32_0 = arith.constant 0 : i32
    return %arg0, %c0_i32, %arg1 : i32, i32, i32
  }
  func.func @transform_1(%arg0: i32, %arg1: i32) -> (i32, i32) {
    %c0_i32 = arith.constant 0 : i32
    %c0_i32_0 = arith.constant 0 : i32
    %c0_i32_1 = arith.constant 0 : i32
    return %c0_i32, %c0_i32_0 : i32, i32
  }
  func.func @transform_2(%arg0: i32, %arg1: i32) -> (i32, i32) {
    %c0_i32 = arith.constant 0 : i32
    %c0_i32_0 = arith.constant 0 : i32
    %c0_i32_1 = arith.constant 0 : i32
    return %c0_i32, %c0_i32_0 : i32, i32
  }
  func.func @transform_3(%arg0: i32, %arg1: i32) -> (i32, i32, i32) {
    %c0_i32 = arith.constant 0 : i32
    %c0_i32_0 = arith.constant 0 : i32
    return %arg0, %c0_i32, %arg1 : i32, i32, i32
  }
}

module attributes {stable_mosaic.version = 11 : i64} {
  func.func @_deconv_bn_gemm_kernel(%arg0: i32, %arg1: i32, %arg2: memref<1x16x128xbf16, #tpu.memory_space<vmem>>, %arg3: memref<1x128x128xbf16, #tpu.memory_space<vmem>>, %arg4: memref<1x16x128xf32, #tpu.memory_space<vmem>>, %arg5: memref<1x1x16x8xf32, #tpu.memory_space<vmem>>) attributes {dimension_semantics = [#tpu.dimension_semantics<parallel>, #tpu.dimension_semantics<parallel>], iteration_bounds = array<i64: 4, 1>, scalar_prefetch = 0 : i64, scratch_operands = 0 : i64, tpu.core_type = #tpu.core_type<tc>, window_params = [{transform_indices = @transform_0, window_bounds = array<i64: 1, 16, 128>}, {transform_indices = @transform_1, window_bounds = array<i64: 1, 128, 128>}, {transform_indices = @transform_2, window_bounds = array<i64: 1, 16, 128>}, {transform_indices = @transform_3, window_bounds = array<i64: 1, 1, 16, 8>}]} {
    %c0 = arith.constant 0 : index
    %c0_0 = arith.constant 0 : index
    %c0_1 = arith.constant 0 : index
    %0 = vector.load %arg2[%c0, %c0_0, %c0_1] : memref<1x16x128xbf16, #tpu.memory_space<vmem>>, vector<1x16x128xbf16>
    %1 = vector.shape_cast %0 : vector<1x16x128xbf16> to vector<16x128xbf16>
    %c0_2 = arith.constant 0 : index
    %c0_3 = arith.constant 0 : index
    %c0_4 = arith.constant 0 : index
    %2 = vector.load %arg3[%c0_2, %c0_3, %c0_4] : memref<1x128x128xbf16, #tpu.memory_space<vmem>>, vector<1x128x128xbf16>
    %3 = vector.shape_cast %2 : vector<1x128x128xbf16> to vector<128x128xbf16>
    %cst = arith.constant dense<0.000000e+00> : vector<16x128xf32>
    %4 = tpu.matmul %1, %3, %cst {dimension_numbers = #tpu.dot_dimension_numbers<[1], [0], [0], [1], [0, 0, 1, 1], [], []>} : vector<16x128xbf16>, vector<128x128xbf16>, vector<16x128xf32> -> vector<16x128xf32>
    %c0_5 = arith.constant 0 : index
    %c0_6 = arith.constant 0 : index
    %c0_7 = arith.constant 0 : index
    %5 = vector.load %arg4[%c0_5, %c0_6, %c0_7] : memref<1x16x128xf32, #tpu.memory_space<vmem>>, vector<1x16x128xf32>
    %6 = vector.shape_cast %5 : vector<1x16x128xf32> to vector<16x128xf32>
    %7 = vector.shape_cast %4 : vector<16x128xf32> to vector<1x16x128xf32>
    tpu.vector_store %arg4[%c0_5, %c0_6, %c0_7], %7 {strides = array<i32>} : memref<1x16x128xf32, #tpu.memory_space<vmem>>, vector<1x16x128xf32>,
    %cst_8 = arith.constant dense<0.000000e+00> : vector<16xf32>
    %8 = vector.multi_reduction <add>, %4, %cst_8 [1] : vector<16x128xf32> to vector<16xf32>
    %9 = vector.shape_cast %8 : vector<16xf32> to vector<16x1xf32>
    %10 = arith.mulf %4, %4 : vector<16x128xf32>
    %cst_9 = arith.constant dense<0.000000e+00> : vector<16xf32>
    %11 = vector.multi_reduction <add>, %10, %cst_9 [1] : vector<16x128xf32> to vector<16xf32>
    %12 = vector.shape_cast %11 : vector<16xf32> to vector<16x1xf32>
    %13 = tpu.iota {dimensions = array<i32: 1>} : vector<16x8xi32>
    %c0_i32 = arith.constant 0 : i32
    %14 = vector.broadcast %c0_i32 : i32 to vector<16x8xi32>
    %15 = arith.cmpi eq, %13, %14 : vector<16x8xi32>
    %c1_i32 = arith.constant 1 : i32
    %16 = vector.broadcast %c1_i32 : i32 to vector<16x8xi32>
    %17 = arith.cmpi eq, %13, %16 : vector<16x8xi32>
    %cst_10 = arith.constant 0.000000e+00 : f32
    %18 = vector.shape_cast %12 : vector<16x1xf32> to vector<16x1xf32>
    %19 = vector.broadcast %18 : vector<16x1xf32> to vector<16x8xf32>
    %20 = vector.broadcast %cst_10 : f32 to vector<16x8xf32>
    %21 = arith.select %17, %19, %20 : vector<16x8xi1>, vector<16x8xf32>
    %22 = vector.shape_cast %9 : vector<16x1xf32> to vector<16x1xf32>
    %23 = vector.broadcast %22 : vector<16x1xf32> to vector<16x8xf32>
    %24 = arith.select %15, %23, %21 : vector<16x8xi1>, vector<16x8xf32>
    %c0_11 = arith.constant 0 : index
    %c0_12 = arith.constant 0 : index
    %c0_13 = arith.constant 0 : index
    %c0_14 = arith.constant 0 : index
    %25 = vector.load %arg5[%c0_11, %c0_12, %c0_13, %c0_14] : memref<1x1x16x8xf32, #tpu.memory_space<vmem>>, vector<1x1x16x8xf32>
    %26 = vector.shape_cast %25 : vector<1x1x16x8xf32> to vector<16x8xf32>
    %27 = vector.shape_cast %24 : vector<16x8xf32> to vector<1x1x16x8xf32>
    tpu.vector_store %arg5[%c0_11, %c0_12, %c0_13, %c0_14], %27 {strides = array<i32>} : memref<1x1x16x8xf32, #tpu.memory_space<vmem>>, vector<1x1x16x8xf32>,
    return
  }
  func.func @transform_0(%arg0: i32, %arg1: i32) -> (i32, i32, i32) {
    %c0_i32 = arith.constant 0 : i32
    %c0_i32_0 = arith.constant 0 : i32
    %c0_i32_1 = arith.constant 0 : i32
    return %arg0, %c0_i32, %c0_i32_0 : i32, i32, i32
  }
  func.func @transform_1(%arg0: i32, %arg1: i32) -> (i32, i32, i32) {
    %c0_i32 = arith.constant 0 : i32
    %c0_i32_0 = arith.constant 0 : i32
    return %arg0, %c0_i32, %arg1 : i32, i32, i32
  }
  func.func @transform_2(%arg0: i32, %arg1: i32) -> (i32, i32, i32) {
    %c0_i32 = arith.constant 0 : i32
    %c0_i32_0 = arith.constant 0 : i32
    return %arg0, %c0_i32, %arg1 : i32, i32, i32
  }
  func.func @transform_3(%arg0: i32, %arg1: i32) -> (i32, i32, i32, i32) {
    %c0_i32 = arith.constant 0 : i32
    %c0_i32_0 = arith.constant 0 : i32
    %c0_i32_1 = arith.constant 0 : i32
    return %arg0, %arg1, %c0_i32, %c0_i32_0 : i32, i32, i32, i32
  }
}

module attributes {stable_mosaic.version = 11 : i64} {
  func.func @_affine_relu_kernel(%arg0: i32, %arg1: i32, %arg2: memref<1x16x128xf32, #tpu.memory_space<vmem>>, %arg3: memref<16x1xf32, #tpu.memory_space<vmem>>, %arg4: memref<16x1xf32, #tpu.memory_space<vmem>>, %arg5: memref<1x16x128xf32, #tpu.memory_space<vmem>>) attributes {dimension_semantics = [#tpu.dimension_semantics<parallel>, #tpu.dimension_semantics<parallel>], iteration_bounds = array<i64: 4, 1>, scalar_prefetch = 0 : i64, scratch_operands = 0 : i64, tpu.core_type = #tpu.core_type<tc>, window_params = [{transform_indices = @transform_0, window_bounds = array<i64: 1, 16, 128>}, {pipeline_mode = #tpu.pipeline_mode<synchronous>, transform_indices = @transform_1, window_bounds = array<i64: 16, 1>}, {pipeline_mode = #tpu.pipeline_mode<synchronous>, transform_indices = @transform_2, window_bounds = array<i64: 16, 1>}, {transform_indices = @transform_3, window_bounds = array<i64: 1, 16, 128>}]} {
    %c0 = arith.constant 0 : index
    %c0_0 = arith.constant 0 : index
    %c0_1 = arith.constant 0 : index
    %0 = vector.load %arg2[%c0, %c0_0, %c0_1] : memref<1x16x128xf32, #tpu.memory_space<vmem>>, vector<1x16x128xf32>
    %1 = vector.shape_cast %0 : vector<1x16x128xf32> to vector<16x128xf32>
    %c0_2 = arith.constant 0 : index
    %c0_3 = arith.constant 0 : index
    %2 = vector.load %arg3[%c0_2, %c0_3] : memref<16x1xf32, #tpu.memory_space<vmem>>, vector<16x1xf32>
    %3 = vector.broadcast %2 : vector<16x1xf32> to vector<16x128xf32>
    %4 = arith.mulf %1, %3 : vector<16x128xf32>
    %c0_4 = arith.constant 0 : index
    %c0_5 = arith.constant 0 : index
    %5 = vector.load %arg4[%c0_4, %c0_5] : memref<16x1xf32, #tpu.memory_space<vmem>>, vector<16x1xf32>
    %6 = vector.broadcast %5 : vector<16x1xf32> to vector<16x128xf32>
    %7 = arith.addf %4, %6 : vector<16x128xf32>
    %cst = arith.constant 0.000000e+00 : f32
    %8 = vector.broadcast %cst : f32 to vector<16x128xf32>
    %9 = arith.maximumf %7, %8 : vector<16x128xf32>
    %c0_6 = arith.constant 0 : index
    %c0_7 = arith.constant 0 : index
    %c0_8 = arith.constant 0 : index
    %10 = vector.load %arg5[%c0_6, %c0_7, %c0_8] : memref<1x16x128xf32, #tpu.memory_space<vmem>>, vector<1x16x128xf32>
    %11 = vector.shape_cast %10 : vector<1x16x128xf32> to vector<16x128xf32>
    %12 = vector.shape_cast %9 : vector<16x128xf32> to vector<1x16x128xf32>
    tpu.vector_store %arg5[%c0_6, %c0_7, %c0_8], %12 {strides = array<i32>} : memref<1x16x128xf32, #tpu.memory_space<vmem>>, vector<1x16x128xf32>,
    return
  }
  func.func @transform_0(%arg0: i32, %arg1: i32) -> (i32, i32, i32) {
    %c0_i32 = arith.constant 0 : i32
    %c0_i32_0 = arith.constant 0 : i32
    return %arg0, %c0_i32, %arg1 : i32, i32, i32
  }
  func.func @transform_1(%arg0: i32, %arg1: i32) -> (i32, i32) {
    %c0_i32 = arith.constant 0 : i32
    %c0_i32_0 = arith.constant 0 : i32
    %c0_i32_1 = arith.constant 0 : i32
    return %c0_i32, %c0_i32_0 : i32, i32
  }
  func.func @transform_2(%arg0: i32, %arg1: i32) -> (i32, i32) {
    %c0_i32 = arith.constant 0 : i32
    %c0_i32_0 = arith.constant 0 : i32
    %c0_i32_1 = arith.constant 0 : i32
    return %c0_i32, %c0_i32_0 : i32, i32
  }
  func.func @transform_3(%arg0: i32, %arg1: i32) -> (i32, i32, i32) {
    %c0_i32 = arith.constant 0 : i32
    %c0_i32_0 = arith.constant 0 : i32
    return %arg0, %c0_i32, %arg1 : i32, i32, i32
  }
}

module attributes {stable_mosaic.version = 11 : i64} {
  func.func @_deconv_bn_gemm_kernel(%arg0: i32, %arg1: i32, %arg2: memref<1x8x64xbf16, #tpu.memory_space<vmem>>, %arg3: memref<1x64x512xbf16, #tpu.memory_space<vmem>>, %arg4: memref<1x8x512xf32, #tpu.memory_space<vmem>>, %arg5: memref<1x1x8x8xf32, #tpu.memory_space<vmem>>) attributes {dimension_semantics = [#tpu.dimension_semantics<parallel>, #tpu.dimension_semantics<parallel>], iteration_bounds = array<i64: 4, 1>, scalar_prefetch = 0 : i64, scratch_operands = 0 : i64, tpu.core_type = #tpu.core_type<tc>, window_params = [{transform_indices = @transform_0, window_bounds = array<i64: 1, 8, 64>}, {transform_indices = @transform_1, window_bounds = array<i64: 1, 64, 512>}, {transform_indices = @transform_2, window_bounds = array<i64: 1, 8, 512>}, {transform_indices = @transform_3, window_bounds = array<i64: 1, 1, 8, 8>}]} {
    %c0 = arith.constant 0 : index
    %c0_0 = arith.constant 0 : index
    %c0_1 = arith.constant 0 : index
    %0 = vector.load %arg2[%c0, %c0_0, %c0_1] : memref<1x8x64xbf16, #tpu.memory_space<vmem>>, vector<1x8x64xbf16>
    %1 = vector.shape_cast %0 : vector<1x8x64xbf16> to vector<8x64xbf16>
    %c0_2 = arith.constant 0 : index
    %c0_3 = arith.constant 0 : index
    %c0_4 = arith.constant 0 : index
    %2 = vector.load %arg3[%c0_2, %c0_3, %c0_4] : memref<1x64x512xbf16, #tpu.memory_space<vmem>>, vector<1x64x512xbf16>
    %3 = vector.shape_cast %2 : vector<1x64x512xbf16> to vector<64x512xbf16>
    %cst = arith.constant dense<0.000000e+00> : vector<8x512xf32>
    %4 = tpu.matmul %1, %3, %cst {dimension_numbers = #tpu.dot_dimension_numbers<[1], [0], [0], [1], [0, 0, 1, 1], [], []>} : vector<8x64xbf16>, vector<64x512xbf16>, vector<8x512xf32> -> vector<8x512xf32>
    %c0_5 = arith.constant 0 : index
    %c0_6 = arith.constant 0 : index
    %c0_7 = arith.constant 0 : index
    %5 = vector.load %arg4[%c0_5, %c0_6, %c0_7] : memref<1x8x512xf32, #tpu.memory_space<vmem>>, vector<1x8x512xf32>
    %6 = vector.shape_cast %5 : vector<1x8x512xf32> to vector<8x512xf32>
    %7 = vector.shape_cast %4 : vector<8x512xf32> to vector<1x8x512xf32>
    tpu.vector_store %arg4[%c0_5, %c0_6, %c0_7], %7 {strides = array<i32>} : memref<1x8x512xf32, #tpu.memory_space<vmem>>, vector<1x8x512xf32>,
    %cst_8 = arith.constant dense<0.000000e+00> : vector<8xf32>
    %8 = vector.multi_reduction <add>, %4, %cst_8 [1] : vector<8x512xf32> to vector<8xf32>
    %9 = vector.shape_cast %8 : vector<8xf32> to vector<8x1xf32>
    %10 = arith.mulf %4, %4 : vector<8x512xf32>
    %cst_9 = arith.constant dense<0.000000e+00> : vector<8xf32>
    %11 = vector.multi_reduction <add>, %10, %cst_9 [1] : vector<8x512xf32> to vector<8xf32>
    %12 = vector.shape_cast %11 : vector<8xf32> to vector<8x1xf32>
    %13 = tpu.iota {dimensions = array<i32: 1>} : vector<8x8xi32>
    %c0_i32 = arith.constant 0 : i32
    %14 = vector.broadcast %c0_i32 : i32 to vector<8x8xi32>
    %15 = arith.cmpi eq, %13, %14 : vector<8x8xi32>
    %c1_i32 = arith.constant 1 : i32
    %16 = vector.broadcast %c1_i32 : i32 to vector<8x8xi32>
    %17 = arith.cmpi eq, %13, %16 : vector<8x8xi32>
    %cst_10 = arith.constant 0.000000e+00 : f32
    %18 = vector.shape_cast %12 : vector<8x1xf32> to vector<8x1xf32>
    %19 = vector.broadcast %18 : vector<8x1xf32> to vector<8x8xf32>
    %20 = vector.broadcast %cst_10 : f32 to vector<8x8xf32>
    %21 = arith.select %17, %19, %20 : vector<8x8xi1>, vector<8x8xf32>
    %22 = vector.shape_cast %9 : vector<8x1xf32> to vector<8x1xf32>
    %23 = vector.broadcast %22 : vector<8x1xf32> to vector<8x8xf32>
    %24 = arith.select %15, %23, %21 : vector<8x8xi1>, vector<8x8xf32>
    %c0_11 = arith.constant 0 : index
    %c0_12 = arith.constant 0 : index
    %c0_13 = arith.constant 0 : index
    %c0_14 = arith.constant 0 : index
    %25 = vector.load %arg5[%c0_11, %c0_12, %c0_13, %c0_14] : memref<1x1x8x8xf32, #tpu.memory_space<vmem>>, vector<1x1x8x8xf32>
    %26 = vector.shape_cast %25 : vector<1x1x8x8xf32> to vector<8x8xf32>
    %27 = vector.shape_cast %24 : vector<8x8xf32> to vector<1x1x8x8xf32>
    tpu.vector_store %arg5[%c0_11, %c0_12, %c0_13, %c0_14], %27 {strides = array<i32>} : memref<1x1x8x8xf32, #tpu.memory_space<vmem>>, vector<1x1x8x8xf32>,
    return
  }
  func.func @transform_0(%arg0: i32, %arg1: i32) -> (i32, i32, i32) {
    %c0_i32 = arith.constant 0 : i32
    %c0_i32_0 = arith.constant 0 : i32
    %c0_i32_1 = arith.constant 0 : i32
    return %arg0, %c0_i32, %c0_i32_0 : i32, i32, i32
  }
  func.func @transform_1(%arg0: i32, %arg1: i32) -> (i32, i32, i32) {
    %c0_i32 = arith.constant 0 : i32
    %c0_i32_0 = arith.constant 0 : i32
    return %arg0, %c0_i32, %arg1 : i32, i32, i32
  }
  func.func @transform_2(%arg0: i32, %arg1: i32) -> (i32, i32, i32) {
    %c0_i32 = arith.constant 0 : i32
    %c0_i32_0 = arith.constant 0 : i32
    return %arg0, %c0_i32, %arg1 : i32, i32, i32
  }
  func.func @transform_3(%arg0: i32, %arg1: i32) -> (i32, i32, i32, i32) {
    %c0_i32 = arith.constant 0 : i32
    %c0_i32_0 = arith.constant 0 : i32
    %c0_i32_1 = arith.constant 0 : i32
    return %arg0, %arg1, %c0_i32, %c0_i32_0 : i32, i32, i32, i32
  }
}

module attributes {stable_mosaic.version = 11 : i64} {
  func.func @_affine_relu_kernel(%arg0: i32, %arg1: i32, %arg2: memref<1x8x512xf32, #tpu.memory_space<vmem>>, %arg3: memref<8x1xf32, #tpu.memory_space<vmem>>, %arg4: memref<8x1xf32, #tpu.memory_space<vmem>>, %arg5: memref<1x8x512xf32, #tpu.memory_space<vmem>>) attributes {dimension_semantics = [#tpu.dimension_semantics<parallel>, #tpu.dimension_semantics<parallel>], iteration_bounds = array<i64: 4, 1>, scalar_prefetch = 0 : i64, scratch_operands = 0 : i64, tpu.core_type = #tpu.core_type<tc>, window_params = [{transform_indices = @transform_0, window_bounds = array<i64: 1, 8, 512>}, {pipeline_mode = #tpu.pipeline_mode<synchronous>, transform_indices = @transform_1, window_bounds = array<i64: 8, 1>}, {pipeline_mode = #tpu.pipeline_mode<synchronous>, transform_indices = @transform_2, window_bounds = array<i64: 8, 1>}, {transform_indices = @transform_3, window_bounds = array<i64: 1, 8, 512>}]} {
    %c0 = arith.constant 0 : index
    %c0_0 = arith.constant 0 : index
    %c0_1 = arith.constant 0 : index
    %0 = vector.load %arg2[%c0, %c0_0, %c0_1] : memref<1x8x512xf32, #tpu.memory_space<vmem>>, vector<1x8x512xf32>
    %1 = vector.shape_cast %0 : vector<1x8x512xf32> to vector<8x512xf32>
    %c0_2 = arith.constant 0 : index
    %c0_3 = arith.constant 0 : index
    %2 = vector.load %arg3[%c0_2, %c0_3] : memref<8x1xf32, #tpu.memory_space<vmem>>, vector<8x1xf32>
    %3 = vector.broadcast %2 : vector<8x1xf32> to vector<8x512xf32>
    %4 = arith.mulf %1, %3 : vector<8x512xf32>
    %c0_4 = arith.constant 0 : index
    %c0_5 = arith.constant 0 : index
    %5 = vector.load %arg4[%c0_4, %c0_5] : memref<8x1xf32, #tpu.memory_space<vmem>>, vector<8x1xf32>
    %6 = vector.broadcast %5 : vector<8x1xf32> to vector<8x512xf32>
    %7 = arith.addf %4, %6 : vector<8x512xf32>
    %cst = arith.constant 0.000000e+00 : f32
    %8 = vector.broadcast %cst : f32 to vector<8x512xf32>
    %9 = arith.maximumf %7, %8 : vector<8x512xf32>
    %c0_6 = arith.constant 0 : index
    %c0_7 = arith.constant 0 : index
    %c0_8 = arith.constant 0 : index
    %10 = vector.load %arg5[%c0_6, %c0_7, %c0_8] : memref<1x8x512xf32, #tpu.memory_space<vmem>>, vector<1x8x512xf32>
    %11 = vector.shape_cast %10 : vector<1x8x512xf32> to vector<8x512xf32>
    %12 = vector.shape_cast %9 : vector<8x512xf32> to vector<1x8x512xf32>
    tpu.vector_store %arg5[%c0_6, %c0_7, %c0_8], %12 {strides = array<i32>} : memref<1x8x512xf32, #tpu.memory_space<vmem>>, vector<1x8x512xf32>,
    return
  }
  func.func @transform_0(%arg0: i32, %arg1: i32) -> (i32, i32, i32) {
    %c0_i32 = arith.constant 0 : i32
    %c0_i32_0 = arith.constant 0 : i32
    return %arg0, %c0_i32, %arg1 : i32, i32, i32
  }
  func.func @transform_1(%arg0: i32, %arg1: i32) -> (i32, i32) {
    %c0_i32 = arith.constant 0 : i32
    %c0_i32_0 = arith.constant 0 : i32
    %c0_i32_1 = arith.constant 0 : i32
    return %c0_i32, %c0_i32_0 : i32, i32
  }
  func.func @transform_2(%arg0: i32, %arg1: i32) -> (i32, i32) {
    %c0_i32 = arith.constant 0 : i32
    %c0_i32_0 = arith.constant 0 : i32
    %c0_i32_1 = arith.constant 0 : i32
    return %c0_i32, %c0_i32_0 : i32, i32
  }
  func.func @transform_3(%arg0: i32, %arg1: i32) -> (i32, i32, i32) {
    %c0_i32 = arith.constant 0 : i32
    %c0_i32_0 = arith.constant 0 : i32
    return %arg0, %c0_i32, %arg1 : i32, i32, i32
  }
}

module attributes {stable_mosaic.version = 11 : i64} {
  func.func @_deconv_tanh_gemm_kernel(%arg0: i32, %arg1: i32, %arg2: memref<1x3x32xbf16, #tpu.memory_space<vmem>>, %arg3: memref<1x32x2048xbf16, #tpu.memory_space<vmem>>, %arg4: memref<1x3x2048xf32, #tpu.memory_space<vmem>>) attributes {dimension_semantics = [#tpu.dimension_semantics<parallel>, #tpu.dimension_semantics<parallel>], iteration_bounds = array<i64: 4, 1>, scalar_prefetch = 0 : i64, scratch_operands = 0 : i64, tpu.core_type = #tpu.core_type<tc>, window_params = [{transform_indices = @transform_0, window_bounds = array<i64: 1, 3, 32>}, {transform_indices = @transform_1, window_bounds = array<i64: 1, 32, 2048>}, {transform_indices = @transform_2, window_bounds = array<i64: 1, 3, 2048>}]} {
    %c0 = arith.constant 0 : index
    %c0_0 = arith.constant 0 : index
    %c0_1 = arith.constant 0 : index
    %0 = vector.load %arg2[%c0, %c0_0, %c0_1] : memref<1x3x32xbf16, #tpu.memory_space<vmem>>, vector<1x3x32xbf16>
    %1 = vector.shape_cast %0 : vector<1x3x32xbf16> to vector<3x32xbf16>
    %c0_2 = arith.constant 0 : index
    %c0_3 = arith.constant 0 : index
    %c0_4 = arith.constant 0 : index
    %2 = vector.load %arg3[%c0_2, %c0_3, %c0_4] : memref<1x32x2048xbf16, #tpu.memory_space<vmem>>, vector<1x32x2048xbf16>
    %3 = vector.shape_cast %2 : vector<1x32x2048xbf16> to vector<32x2048xbf16>
    %cst = arith.constant dense<0.000000e+00> : vector<3x2048xf32>
    %4 = tpu.matmul %1, %3, %cst {dimension_numbers = #tpu.dot_dimension_numbers<[1], [0], [0], [1], [0, 0, 1, 1], [], []>} : vector<3x32xbf16>, vector<32x2048xbf16>, vector<3x2048xf32> -> vector<3x2048xf32>
    %5 = math.tanh %4 : vector<3x2048xf32>
    %c0_5 = arith.constant 0 : index
    %c0_6 = arith.constant 0 : index
    %c0_7 = arith.constant 0 : index
    %6 = vector.load %arg4[%c0_5, %c0_6, %c0_7] : memref<1x3x2048xf32, #tpu.memory_space<vmem>>, vector<1x3x2048xf32>
    %7 = vector.shape_cast %6 : vector<1x3x2048xf32> to vector<3x2048xf32>
    %8 = vector.shape_cast %5 : vector<3x2048xf32> to vector<1x3x2048xf32>
    tpu.vector_store %arg4[%c0_5, %c0_6, %c0_7], %8 {strides = array<i32>} : memref<1x3x2048xf32, #tpu.memory_space<vmem>>, vector<1x3x2048xf32>,
    return
  }
  func.func @transform_0(%arg0: i32, %arg1: i32) -> (i32, i32, i32) {
    %c0_i32 = arith.constant 0 : i32
    %c0_i32_0 = arith.constant 0 : i32
    %c0_i32_1 = arith.constant 0 : i32
    return %arg0, %c0_i32, %c0_i32_0 : i32, i32, i32
  }
  func.func @transform_1(%arg0: i32, %arg1: i32) -> (i32, i32, i32) {
    %c0_i32 = arith.constant 0 : i32
    %c0_i32_0 = arith.constant 0 : i32
    return %arg0, %c0_i32, %arg1 : i32, i32, i32
  }
  func.func @transform_2(%arg0: i32, %arg1: i32) -> (i32, i32, i32) {
    %c0_i32 = arith.constant 0 : i32
    %c0_i32_0 = arith.constant 0 : i32
    return %arg0, %c0_i32, %arg1 : i32, i32, i32
  }
}

</mosaic_0001>

<bundles_post_ra>
// kernel: deconv_decoder_forward.8
= control target key start
LH: loop header
LB: loop body
LE: loop exit
PB: predicated region body
PF: predicated region fallthrough
CT: control target
= control target key end

     0   :  { %s438_s12 = smov 0   ;;  %s440_s13 = smov 0   ;;  %s499_s0 = inlined_call_operand.vmem [shape: f32[4,32,128], index: 0, kind: input, shape index: {}]   ;;  %s500_s1 = inlined_call_operand.vmem [shape: f32[32,1], index: 1, kind: input, shape index: {}]   ;;  %s501_s2 = inlined_call_operand.vmem [shape: f32[32,1], index: 2, kind: input, shape index: {}]   ;;  %s502_s3 = inlined_call_operand.vmem [shape: f32[4,32,128], index: 3, kind: output, shape index: {}]  }
   0x1   :  { %s442_s14 = smov 0  }
   0x2 LB: > { %s25_s15 = sadd.s32 1, %s411_s13  ;;  %p357_p0 = scmp.ge.s32.totalorder %s415_s14, 1  ;;  %s415_s14 = sphi %s442_s14, %s13_s14   ;;  %s411_s13 = sphi %s440_s13, %s504_s13   ;;  %s407_s12 = sphi %s438_s12, %s503_s12  }
   0x3   : > { %p27_p1 = scmp.ge.s32.totalorder %s25_s15, 4  ;;  %p156_p2 = scmp.lt.s32.totalorder %s415_s14, 5 }
   0x5   : > { %s506_s15 = smov (%p27_p1, %s25_s15), 0  ;;  %p157_p3 = pnand %p357_p0, %p156_p2 }
   0x6   : > { %p186_p4 = scmp.lt.s32.totalorder (!%p157_p3), %s407_s12, 3 }
   0x7   : > { %160 = sbr.rel (%p157_p3) target bundleno = 155 (0x9b), region = 32 }
   0xc   : > { %v208_v0 = vld [vmem:[%s500_s1 + $0x10] sm:$0xff]  ;;  %v206_v1 = vld [vmem:[%s500_s1] sm:$0xff]  ;;  %v417_v2 = vmov 0   ;;  %v209_v3 = vld [vmem:[%s500_s1 + $0x18] sm:$0xff]  ;;  %s508_s12 = smov (!%p186_p4, %s407_s12), 3 }
   0xd   : > { %392 = vset.pattern.permute.xlu1 %v417_v2  ;;  %391 = vset.pattern.permute.xlu0 %v417_v2  ;;  %v207_v4 = vld [vmem:[%s500_s1 + $0x8] sm:$0xff]  ;;  %v234_v6 = vld [vmem:[%s501_s2] sm:$0xff]  ;;  %v237_v7 = vld [vmem:[%s501_s2 + $0x18] sm:$0xff]  ;;  %s364_s5 = sshll.u32 %s508_s12, 5 }
   0xe   : > { %222 = vperm.xlu1 %392, %v208_v0   ;;  %212 = vperm.xlu0 %391, %v206_v1   ;;  %v235_v5 = vld [vmem:[%s501_s2 + $0x8] sm:$0xff]  ;;  %v236_v8 = vld [vmem:[%s501_s2 + $0x10] sm:$0xff]  ;;  %s193_s8 = scalar_lea.vmem %s499_s0, %s364_s5  ;;  %s201_s11 = scalar_lea.vmem %s502_s3, %s364_s5 }
   0xf   : > { %v202_v11 = vld [vmem:[%s193_s8] sm:$0xff]  ;;  %v203_v14 = vld [vmem:[%s193_s8 + $0x8] sm:$0xff]  ;;  %v204_v17 = vld [vmem:[%s193_s8 + $0x10] sm:$0xff] }
  0x10   : > { %v205_v18 = vld [vmem:[%s193_s8 + $0x18] sm:$0xff] }
  0x12   : > { %227 = vperm.xlu1 %392, %v209_v3   ;;  %217 = vperm.xlu0 %391, %v207_v4  }
  0x16   : > { %245 = vperm.xlu1 %392, %v235_v5   ;;  %240 = vperm.xlu0 %391, %v234_v6  }
  0x1a   : > { %255 = vperm.xlu1 %392, %v237_v7   ;;  %250 = vperm.xlu0 %391, %v236_v8  }
  0x89   : > { %v223_v9 = vpop.permute.xlu1 %222  ;;  %v213_v10 = vpop.permute.xlu0 %212 }
  0x8a   : > { %v230_v15 = vmul.f32 %v213_v10, %v202_v11  ;;  %v232_v23 = vmul.f32 %v223_v9, %v204_v17 }
  0x8d   : > { %v228_v12 = vpop.permute.xlu1 %227  ;;  %v218_v13 = vpop.permute.xlu0 %217 }
  0x8e   : > { %v231_v16 = vmul.f32 %v218_v13, %v203_v14  ;;  %v233_v24 = vmul.f32 %v228_v12, %v205_v18 }
  0x91   : > { %v246_v19 = vpop.permute.xlu1 %245  ;;  %v241_v20 = vpop.permute.xlu0 %240 }
  0x92   : > { %v259_v21 = vadd.f32 %v246_v19, %v231_v16  ;;  %v258_v22 = vadd.f32 %v241_v20, %v230_v15 }
  0x94   : > { %v263_v25 = vmax.f32 %v259_v21, 0.0  ;;  %v262_v26 = vmax.f32 %v258_v22, 0.0 }
  0x95   : > { %v256_v27 = vpop.permute.xlu1 %255  ;;  %v251_v28 = vpop.permute.xlu0 %250 }
  0x96   : > { %267 = vst [vmem:[%s201_s11 + $0x8] sm:$0xff] %v263_v25  ;;  %266 = vst [vmem:[%s201_s11] sm:$0xff] %v262_v26  ;;  %v261_v29 = vadd.f32 %v256_v27, %v233_v24  ;;  %v260_v30 = vadd.f32 %v251_v28, %v232_v23 }
  0x98   : > { %v265_v31 = vmax.f32 %v261_v29, 0.0  ;;  %v264_v32 = vmax.f32 %v260_v30, 0.0 }
  0x9a   : > { %269 = vst [vmem:[%s201_s11 + $0x18] sm:$0xff] %v265_v31  ;;  %268 = vst [vmem:[%s201_s11 + $0x10] sm:$0xff] %v264_v32 }
  0x9b PF: > { %s13_s14 = sadd.s32 1, %s415_s14   ;;  %s503_s12 = smov %s411_s13 }
  0x9c   : > { %p10_p5 = scmp.ge.s32.totalorder %s13_s14, 6   ;;  %s504_s13 = smov %s506_s15 }
  0x9e   :  { %12 = sbr.rel (!%p10_p5) target bundleno = 2 (0x2), region = 62 }

// kernel: deconv_decoder_forward.7
= control target key start
LH: loop header
LB: loop body
LE: loop exit
PB: predicated region body
PF: predicated region fallthrough
CT: control target
= control target key end

     0   :  { %s809_s12 = smov 0   ;;  %s811_s13 = smov 0   ;;  %s883_s0 = inlined_call_operand.vmem [shape: bf16[4,32,256], index: 0, kind: input, shape index: {}]   ;;  %s884_s1 = inlined_call_operand.vmem [shape: bf16[4,256,128], index: 1, kind: input, shape index: {}]   ;;  %s885_s2 = inlined_call_operand.vmem [shape: f32[4,32,128], index: 2, kind: output, shape index: {0}]   ;;  %s886_s3 = inlined_call_operand.vmem [shape: f32[4,1,32,8], index: 3, kind: output, shape index: {1}]  }
   0x1   :  { %s813_s14 = smov 0  }
   0x2 LB: > { %s26_s15 = sadd.s32 1, %s783_s13  ;;  %p640_p0 = scmp.ge.s32.totalorder %s787_s14, 1  ;;  %s787_s14 = sphi %s813_s14, %s14_s14   ;;  %s783_s13 = sphi %s811_s13, %s888_s13   ;;  %s779_s12 = sphi %s809_s12, %s887_s12  }
   0x3   : > { %p28_p1 = scmp.ge.s32.totalorder %s26_s15, 4  ;;  %p171_p2 = scmp.lt.s32.totalorder %s787_s14, 5 }
   0x5   : > { %s890_s15 = smov (%p28_p1, %s26_s15), 0  ;;  %p172_p3 = pnand %p640_p0, %p171_p2 }
   0x6   : > { %p215_p4 = scmp.lt.s32.totalorder (!%p172_p3), %s779_s12, 3 }
   0x7   : > { %175 = sbr.rel (%p172_p3) target bundleno = 399 (0x18f), region = 28 }
   0xc   : > { %s892_s12 = smov (!%p215_p4, %s779_s12), 3  ;;  %v471_v36 = vlaneseq  ;;  %vm483_vm2 = vcmask 64512  }
   0xd   : > { %s672_s16 = sshll.u32 %s892_s12, 7  ;;  %s840_s20 = sshll.u32 %s892_s12, 5 }
   0xe   : > { %s830_s19 = scalar_lea.vmem %s884_s1, %s672_s16  ;;  %s219_s23 = scalar_lea.vmem %s883_s0, %s840_s20  ;;  %v472_v38 = vand.u32 127, %v471_v36 }
   0xf   : > { %v743_v0 = vld [vmem:[%s830_s19 + $0x78] sm:$0xff]   ;;  %v745_v2 = vld [vmem:[%s830_s19 + $0x70] sm:$0xff]   ;;  %v747_v4 = vld [vmem:[%s830_s19 + $0x68] sm:$0xff]   ;;  %s235_s26 = scalar_lea.vmem %s885_s2, %s840_s20  ;;  %s244_s29 = scalar_lea.vmem %s886_s3, %s840_s20 }
  0x10   : > { %v744_v1 = vld [vmem:[%s830_s19 + $0x38] sm:$0xff]   ;;  %675 = vmatprep.subr.bf16.mxu0 %v743_v0  ;;  %703 = vmatprep.subr.bf16.mxu1 %v743_v0  ;;  %v746_v3 = vld [vmem:[%s830_s19 + $0x30] sm:$0xff]   ;;  %v748_v5 = vld [vmem:[%s830_s19 + $0x28] sm:$0xff]   ;;  %vm473_vm0 = vcmp.eq.s32.totalorder %v472_v38, 0  ;;  %vm474_vm1 = vcmp.eq.s32.totalorder %v472_v38, 1 }
  0x11   : > { %676 = vmatpush3.bf16.msra.mxu0 %v744_v1  ;;  %711 = vmatpush3.bf16.msra.mxu1 %v744_v1  ;;  %v749_v6 = vld [vmem:[%s830_s19 + $0x60] sm:$0xff]   ;;  %v751_v8 = vld [vmem:[%s830_s19 + $0x58] sm:$0xff]   ;;  %v753_v10 = vld [vmem:[%s830_s19 + $0x50] sm:$0xff]  }
  0x12   : > { %677 = vmatprep.subr.bf16.mxu0 %v745_v2  ;;  %704 = vmatprep.subr.bf16.mxu1 %v745_v2  ;;  %v750_v7 = vld [vmem:[%s830_s19 + $0x20] sm:$0xff]   ;;  %v752_v9 = vld [vmem:[%s830_s19 + $0x18] sm:$0xff]   ;;  %v754_v13 = vld [vmem:[%s830_s19 + $0x10] sm:$0xff]  }
  0x13   : > { %v761_v11 = vld [vmem:[%s219_s23 + $0x4] ss:$8 sps:$4 sm:$0xff]   ;;  %v764_v12 = vld [vmem:[%s219_s23 + $0x14] ss:$8 sps:$4 sm:$0xff]   ;;  %v759_v18 = vld [vmem:[%s219_s23] ss:$8 sps:$4 sm:$0xff]  }
  0x14   : > { %v755_v14 = vld [vmem:[%s830_s19 + $0x48] sm:$0xff]   ;;  %430 = vmatprep.mubr.bf16.mxu0 %v761_v11  ;;  %438 = vmatprep.mubr.bf16.mxu1 %v764_v12  ;;  %v757_v16 = vld [vmem:[%s830_s19 + $0x40] sm:$0xff]   ;;  %v762_v19 = vld [vmem:[%s219_s23 + $0x10] ss:$8 sps:$4 sm:$0xff]  }
  0x15   : > { %678 = vmatpush3.bf16.msra.mxu0 %v746_v3  ;;  %712 = vmatpush3.bf16.msra.mxu1 %v746_v3  ;;  %v756_v15 = vld [vmem:[%s830_s19 + $0x8] sm:$0xff]   ;;  %v758_v17 = vld [vmem:[%s830_s19] sm:$0xff]  }
  0x16   : > { %679 = vmatprep.subr.bf16.mxu0 %v747_v4  ;;  %705 = vmatprep.subr.bf16.mxu1 %v747_v4 }
  0x19   : > { %680 = vmatpush3.bf16.msra.mxu0 %v748_v5  ;;  %713 = vmatpush3.bf16.msra.mxu1 %v748_v5 }
  0x1a   : > { %681 = vmatprep.subr.bf16.mxu0 %v749_v6  ;;  %706 = vmatprep.subr.bf16.mxu1 %v749_v6 }
  0x1d   : > { %682 = vmatpush3.bf16.msra.mxu0 %v750_v7  ;;  %714 = vmatpush3.bf16.msra.mxu1 %v750_v7 }
  0x1e   : > { %683 = vmatprep.subr.bf16.mxu0 %v751_v8  ;;  %707 = vmatprep.subr.bf16.mxu1 %v751_v8 }
  0x21   : > { %684 = vmatpush3.bf16.msra.mxu0 %v752_v9  ;;  %715 = vmatpush3.bf16.msra.mxu1 %v752_v9 }
  0x22   : > { %685 = vmatprep.subr.bf16.mxu0 %v753_v10  ;;  %708 = vmatprep.subr.bf16.mxu1 %v753_v10 }
  0x25   : > { %686 = vmatpush3.bf16.msra.mxu0 %v754_v13  ;;  %716 = vmatpush3.bf16.msra.mxu1 %v754_v13 }
  0x26   : > { %687 = vmatprep.subr.bf16.mxu0 %v755_v14  ;;  %709 = vmatprep.subr.bf16.mxu1 %v755_v14 }
  0x29   : > { %688 = vmatpush3.bf16.msra.mxu0 %v756_v15  ;;  %717 = vmatpush3.bf16.msra.mxu1 %v756_v15 }
  0x2a   : > { %689 = vmatprep.subr.bf16.mxu0 %v757_v16  ;;  %710 = vmatprep.subr.bf16.mxu1 %v757_v16 }
  0x2d   : > { %690 = vmatpush3.bf16.msra.mxu0 %v758_v17  ;;  %718 = vmatpush3.bf16.msra.mxu1 %v758_v17 }
  0x30   : > { %431 = vmatmul.mubr.bf16.vlgmr.msra.gmra.mxu0 %v759_v18  ;;  %439 = vmatmul.mubr.bf16.vlgmr.msra.gmra.mxu1 %v762_v19 }
  0xf0   : > { %v691_v20 = vpop.f32.mrf.mxu0  ;;  %v697_v21 = vpop.f32.mrf.mxu1 }
  0xf2   : > { %v692_v22 = vpop.f32.mrf.mxu0  ;;  %v698_v23 = vpop.f32.mrf.mxu1 }
  0xf3   : > { %v693_v24 = vadd.f32 %v692_v22, %v691_v20  ;;  %v699_v25 = vadd.f32 %v698_v23, %v697_v21 }
  0xf4   : > { %v694_v26 = vpop.f32.mrf.mxu0  ;;  %v700_v27 = vpop.f32.mrf.mxu1 }
  0xf5   : > { %447 = vst [vmem:[%s235_s26] sm:$0xff] %v693_v24  ;;  %449 = vst [vmem:[%s235_s26 + $0x10] sm:$0xff] %v699_v25  ;;  %451 = vadd.xlane.f32.xlu0 %v693_v24  ;;  %v461_v28 = vmul.f32 %v699_v25, %v699_v25  ;;  %v459_v33 = vmul.f32 %v693_v24, %v693_v24 }
  0xf6   : > { %v695_v29 = vpop.f32.mrf.mxu0  ;;  %v701_v30 = vpop.f32.mrf.mxu1 }
  0xf7   : > { %v696_v31 = vadd.f32 %v695_v29, %v694_v26  ;;  %v702_v32 = vadd.f32 %v701_v30, %v700_v27  ;;  %467 = vadd.xlane.f32.xlu1 %v461_v28 }
  0xf9   : > { %448 = vst [vmem:[%s235_s26 + $0x8] sm:$0xff] %v696_v31  ;;  %450 = vst [vmem:[%s235_s26 + $0x18] sm:$0xff] %v702_v32  ;;  %463 = vadd.xlane.f32.xlu0 %v459_v33  ;;  %v460_v34 = vmul.f32 %v696_v31, %v696_v31  ;;  %v462_v35 = vmul.f32 %v702_v32, %v702_v32 }
  0xfb   : > { %453 = vadd.xlane.f32.xlu1 %v696_v31 }
  0xfd   : > { %465 = vadd.xlane.f32.xlu0 %v460_v34 }
  0xff   : > { %469 = vadd.xlane.f32.xlu1 %v462_v35 }
 0x101   : > { %455 = vadd.xlane.f32.xlu0 %v699_v25 }
 0x103   : > { %457 = vadd.xlane.f32.xlu1 %v702_v32 }
 0x17e   : > { %v452_v37 = vpop.xlane.xlu0 %451 }
 0x180   : > { %v468_v39 = vpop.xlane.xlu1 %467 }
 0x181   : > { %v477_v48 = vsel %vm474_vm1, %v468_v39, 0.0 }
 0x182   : > { %v464_v40 = vpop.xlane.xlu0 %463 }
 0x183   : > { %v475_v41 = vsel %vm474_vm1, %v464_v40, 0.0 }
 0x184   : > { %v479_v42 = vsel %vm473_vm0, %v452_v37, %v475_v41  ;;  %v454_v43 = vpop.xlane.xlu1 %453 }
 0x185   : > { %484 = vst.msk [vmem:[%s244_s29] sm:$0xff] %vm483_vm2, %v479_v42 }
 0x186   : > { %v466_v44 = vpop.xlane.xlu0 %465 }
 0x187   : > { %v476_v45 = vsel %vm474_vm1, %v466_v44, 0.0 }
 0x188   : > { %v480_v46 = vsel %vm473_vm0, %v454_v43, %v476_v45  ;;  %v470_v47 = vpop.xlane.xlu1 %469 }
 0x189   : > { %485 = vst.msk [vmem:[%s244_s29 + $0x8] sm:$0xff] %vm483_vm2, %v480_v46  ;;  %v478_v51 = vsel %vm474_vm1, %v470_v47, 0.0 }
 0x18a   : > { %v456_v49 = vpop.xlane.xlu0 %455 }
 0x18b   : > { %v481_v50 = vsel %vm473_vm0, %v456_v49, %v477_v48 }
 0x18c   : > { %486 = vst.msk [vmem:[%s244_s29 + $0x10] sm:$0xff] %vm483_vm2, %v481_v50  ;;  %v458_v52 = vpop.xlane.xlu1 %457 }
 0x18d   : > { %v482_v53 = vsel %vm473_vm0, %v458_v52, %v478_v51 }
 0x18e   : > { %487 = vst.msk [vmem:[%s244_s29 + $0x18] sm:$0xff] %vm483_vm2, %v482_v53 }
 0x18f PF: > { %s14_s14 = sadd.s32 1, %s787_s14   ;;  %s887_s12 = smov %s783_s13 }
 0x190   : > { %p11_p5 = scmp.ge.s32.totalorder %s14_s14, 6   ;;  %s888_s13 = smov %s890_s15 }
 0x192   :  { %13 = sbr.rel (!%p11_p5) target bundleno = 2 (0x2), region = 73 }

// kernel: deconv_decoder_forward.9
= control target key start
LH: loop header
LB: loop body
LE: loop exit
PB: predicated region body
PF: predicated region fallthrough
CT: control target
= control target key end

     0   :  { %s668_s12 = smov 0   ;;  %s670_s13 = smov 0   ;;  %s712_s0 = inlined_call_operand.vmem [shape: bf16[4,16,128], index: 0, kind: input, shape index: {}]   ;;  %s713_s1 = inlined_call_operand.vmem [shape: bf16[4,128,128], index: 1, kind: input, shape index: {}]   ;;  %s714_s2 = inlined_call_operand.vmem [shape: f32[4,16,128], index: 2, kind: output, shape index: {0}]   ;;  %s715_s3 = inlined_call_operand.vmem [shape: f32[4,1,16,8], index: 3, kind: output, shape index: {1}]  }
   0x1   :  { %s672_s14 = smov 0  }
   0x2 LB: > { %s26_s15 = sadd.s32 1, %s640_s13  ;;  %p534_p0 = scmp.ge.s32.totalorder %s644_s14, 1  ;;  %s644_s14 = sphi %s672_s14, %s14_s14   ;;  %s640_s13 = sphi %s670_s13, %s717_s13   ;;  %s636_s12 = sphi %s668_s12, %s716_s12  }
   0x3   : > { %p28_p1 = scmp.ge.s32.totalorder %s26_s15, 4  ;;  %p171_p2 = scmp.lt.s32.totalorder %s644_s14, 5 }
   0x5   : > { %s719_s15 = smov (%p28_p1, %s26_s15), 0  ;;  %p172_p3 = pnand %p534_p0, %p171_p2 }
   0x6   : > { %p215_p4 = scmp.lt.s32.totalorder (!%p172_p3), %s636_s12, 3 }
   0x7   : > { %175 = sbr.rel (%p172_p3) target bundleno = 387 (0x183), region = 28 }
   0xc   : > { %v646_v0 = vmov 0.0   ;;  %vm647_vm0 = vmmov 0   ;;  %s721_s12 = smov (!%p215_p4, %s636_s12), 3  ;;  %v371_v16 = vlaneseq  ;;  %vm379_vm3 = vcmask 64512  }
   0xd   : > { %567 = vmatprep.subr.bf16.mxu0 %v646_v0  ;;  %583 = vmatprep.mubr.msk.bf16.mxu0 %vm647_vm0, %v646_v0  ;;  %s555_s16 = sshll.u32 %s721_s12, 6  ;;  %s554_s20 = sshll.u32 %s721_s12, 3 }
   0xe   : > { %s227_s19 = scalar_lea.vmem %s713_s1, %s555_s16  ;;  %s219_s23 = scalar_lea.vmem %s712_s0, %s554_s20  ;;  %v372_v17 = vand.u32 127, %v371_v16 }
   0xf   : > { %v613_v1 = vld [vmem:[%s227_s19 + $0x38] sm:$0xff]   ;;  %v614_v2 = vld [vmem:[%s227_s19 + $0x30] sm:$0xff]   ;;  %v615_v3 = vld [vmem:[%s227_s19 + $0x28] sm:$0xff]   ;;  %s556_s24 = sshll.u32 %s721_s12, 4 }
  0x10   : > { %568 = vmatpush3.bf16.msra.mxu0 %v613_v1  ;;  %v616_v4 = vld [vmem:[%s227_s19 + $0x20] sm:$0xff]   ;;  %v617_v5 = vld [vmem:[%s227_s19 + $0x18] sm:$0xff]   ;;  %v618_v6 = vld [vmem:[%s227_s19 + $0x10] sm:$0xff]   ;;  %s235_s27 = scalar_lea.vmem %s714_s2, %s556_s24  ;;  %vm374_vm1 = vcmp.eq.s32.totalorder %v372_v17, 1  ;;  %vm373_vm2 = vcmp.eq.s32.totalorder %v372_v17, 0  ;;  %s244_s30 = scalar_lea.vmem %s715_s3, %s556_s24 }
  0x11   : > { %569 = vmatprep.subr.bf16.mxu0 %v646_v0  ;;  %v619_v7 = vld [vmem:[%s227_s19 + $0x8] sm:$0xff]   ;;  %v620_v8 = vld [vmem:[%s227_s19] sm:$0xff]  }
  0x12   : > { %v621_v9 = vld [vmem:[%s219_s23] sm:$0xff]  }
  0x14   : > { %570 = vmatpush3.bf16.msra.mxu0 %v614_v2 }
  0x15   : > { %571 = vmatprep.subr.bf16.mxu0 %v646_v0 }
  0x18   : > { %572 = vmatpush3.bf16.msra.mxu0 %v615_v3 }
  0x19   : > { %573 = vmatprep.subr.bf16.mxu0 %v646_v0 }
  0x1c   : > { %574 = vmatpush3.bf16.msra.mxu0 %v616_v4 }
  0x1d   : > { %575 = vmatprep.subr.bf16.mxu0 %v646_v0 }
  0x20   : > { %576 = vmatpush3.bf16.msra.mxu0 %v617_v5 }
  0x21   : > { %577 = vmatprep.subr.bf16.mxu0 %v646_v0 }
  0x24   : > { %578 = vmatpush3.bf16.msra.mxu0 %v618_v6 }
  0x25   : > { %579 = vmatprep.subr.bf16.mxu0 %v646_v0 }
  0x28   : > { %580 = vmatpush3.bf16.msra.mxu0 %v619_v7 }
  0x29   : > { %581 = vmatprep.subr.bf16.mxu0 %v646_v0 }
  0x2c   : > { %582 = vmatpush3.bf16.msra.mxu0 %v620_v8 }
  0x2f   : > { %584 = vmatmul.mubr.bf16.vlgmr.msra.gmra.mxu0 %v621_v9 }
  0xef   : > { %v352_v10 = vpop.f32.mrf.mxu0 }
  0xf0   : > { %359 = vst [vmem:[%s235_s27] sm:$0xff] %v352_v10  ;;  %361 = vadd.xlane.f32.xlu1 %v352_v10  ;;  %v365_v11 = vmul.f32 %v352_v10, %v352_v10 }
  0xf1   : > { %v585_v12 = vpop.f32.mrf.mxu0 }
  0xf2   : > { %367 = vadd.xlane.f32.xlu0 %v365_v11 }
  0xf3   : > { %v355_v13 = vpop.f32.mrf.mxu0 }
  0xf4   : > { %360 = vst [vmem:[%s235_s27 + $0x8] sm:$0xff] %v355_v13  ;;  %363 = vadd.xlane.f32.xlu1 %v355_v13  ;;  %v366_v14 = vmul.f32 %v355_v13, %v355_v13 }
  0xf5   : > { %v586_v15 = vpop.f32.mrf.mxu0 }
  0xf6   : > { %369 = vadd.xlane.f32.xlu0 %v366_v14 }
 0x179   : > { %v362_v18 = vpop.xlane.xlu1 %361 }
 0x17b   : > { %v368_v19 = vpop.xlane.xlu0 %367 }
 0x17c   : > { %v375_v20 = vsel %vm374_vm1, %v368_v19, 0.0 }
 0x17d   : > { %v377_v21 = vsel %vm373_vm2, %v362_v18, %v375_v20  ;;  %v364_v23 = vpop.xlane.xlu1 %363 }
 0x17e   : > { %380 = vst.msk [vmem:[%s244_s30] sm:$0xff] %vm379_vm3, %v377_v21 }
 0x17f   : > { %v370_v22 = vpop.xlane.xlu0 %369 }
 0x180   : > { %v376_v24 = vsel %vm374_vm1, %v370_v22, 0.0 }
 0x181   : > { %v378_v25 = vsel %vm373_vm2, %v364_v23, %v376_v24 }
 0x182   : > { %381 = vst.msk [vmem:[%s244_s30 + $0x8] sm:$0xff] %vm379_vm3, %v378_v25 }
 0x183 PF: > { %s14_s14 = sadd.s32 1, %s644_s14   ;;  %s716_s12 = smov %s640_s13 }
 0x184   : > { %p11_p5 = scmp.ge.s32.totalorder %s14_s14, 6   ;;  %s717_s13 = smov %s719_s15 }
 0x186   :  { %13 = sbr.rel (!%p11_p5) target bundleno = 2 (0x2), region = 73 }

// kernel: deconv_decoder_forward.10
= control target key start
LH: loop header
LB: loop body
LE: loop exit
PB: predicated region body
PF: predicated region fallthrough
CT: control target
= control target key end

     0   :  { %s404_s12 = smov 0   ;;  %s406_s13 = smov 0   ;;  %s449_s0 = inlined_call_operand.vmem [shape: f32[4,16,128], index: 0, kind: input, shape index: {}]   ;;  %s450_s1 = inlined_call_operand.vmem [shape: f32[16,1], index: 1, kind: input, shape index: {}]   ;;  %s451_s2 = inlined_call_operand.vmem [shape: f32[16,1], index: 2, kind: input, shape index: {}]   ;;  %s452_s3 = inlined_call_operand.vmem [shape: f32[4,16,128], index: 3, kind: output, shape index: {}]  }
   0x1   :  { %s408_s14 = smov 0  }
   0x2 LB: > { %s25_s15 = sadd.s32 1, %s377_s13  ;;  %p323_p0 = scmp.ge.s32.totalorder %s381_s14, 1  ;;  %s381_s14 = sphi %s408_s14, %s13_s14   ;;  %s377_s13 = sphi %s406_s13, %s454_s13   ;;  %s373_s12 = sphi %s404_s12, %s453_s12  }
   0x3   : > { %p27_p1 = scmp.ge.s32.totalorder %s25_s15, 4  ;;  %p156_p2 = scmp.lt.s32.totalorder %s381_s14, 5 }
   0x5   : > { %s456_s15 = smov (%p27_p1, %s25_s15), 0  ;;  %p157_p3 = pnand %p323_p0, %p156_p2 }
   0x6   : > { %p186_p4 = scmp.lt.s32.totalorder (!%p157_p3), %s373_s12, 3 }
   0x7   : > { %160 = sbr.rel (%p157_p3) target bundleno = 149 (0x95), region = 32 }
   0xc   : > { %v218_v0 = vld [vmem:[%s451_s2] sm:$0xff]  ;;  %v383_v2 = vmov 0   ;;  %v219_v3 = vld [vmem:[%s451_s2 + $0x8] sm:$0xff]  ;;  %s458_s12 = smov (!%p186_p4, %s373_s12), 3 }
   0xd   : > { %v204_v1 = vld [vmem:[%s450_s1] sm:$0xff]  ;;  %358 = vset.pattern.permute.xlu1 %v383_v2  ;;  %357 = vset.pattern.permute.xlu0 %v383_v2  ;;  %v205_v4 = vld [vmem:[%s450_s1 + $0x8] sm:$0xff]  ;;  %s330_s24 = sshll.u32 %s458_s12, 4 }
   0xe   : > { %222 = vperm.xlu1 %358, %v218_v0   ;;  %208 = vperm.xlu0 %357, %v204_v1   ;;  %s193_s27 = scalar_lea.vmem %s449_s0, %s330_s24  ;;  %s201_s30 = scalar_lea.vmem %s452_s3, %s330_s24 }
   0xf   : > { %v202_v5 = vld [vmem:[%s193_s27] sm:$0xff]  ;;  %v203_v9 = vld [vmem:[%s193_s27 + $0x8] sm:$0xff] }
  0x12   : > { %227 = vperm.xlu1 %358, %v219_v3   ;;  %213 = vperm.xlu0 %357, %v205_v4  }
  0x89   : > { %v223_v6 = vpop.permute.xlu1 %222  ;;  %v209_v7 = vpop.permute.xlu0 %208 }
  0x8a   : > { %v216_v8 = vmul.f32 %v209_v7, %v202_v5 }
  0x8c   : > { %v230_v10 = vadd.f32 %v223_v6, %v216_v8 }
  0x8d   : > { %v214_v11 = vpop.permute.xlu0 %213  ;;  %v228_v14 = vpop.permute.xlu1 %227 }
  0x8e   : > { %v232_v12 = vmax.f32 %v230_v10, 0.0  ;;  %v217_v13 = vmul.f32 %v214_v11, %v203_v9 }
  0x90   : > { %234 = vst [vmem:[%s201_s30] sm:$0xff] %v232_v12  ;;  %v231_v15 = vadd.f32 %v228_v14, %v217_v13 }
  0x92   : > { %v233_v16 = vmax.f32 %v231_v15, 0.0 }
  0x94   : > { %235 = vst [vmem:[%s201_s30 + $0x8] sm:$0xff] %v233_v16 }
  0x95 PF: > { %s13_s14 = sadd.s32 1, %s381_s14   ;;  %s453_s12 = smov %s377_s13 }
  0x96   : > { %p10_p5 = scmp.ge.s32.totalorder %s13_s14, 6   ;;  %s454_s13 = smov %s456_s15 }
  0x98   :  { %12 = sbr.rel (!%p10_p5) target bundleno = 2 (0x2), region = 62 }

// kernel: deconv_decoder_forward.11
= control target key start
LH: loop header
LB: loop body
LE: loop exit
PB: predicated region body
PF: predicated region fallthrough
CT: control target
= control target key end

     0   :  { %s723_s12 = smov 0   ;;  %s725_s13 = smov 0   ;;  %s768_s0 = inlined_call_operand.vmem [shape: bf16[4,8,64], index: 0, kind: input, shape index: {}]   ;;  %s769_s1 = inlined_call_operand.vmem [shape: bf16[4,64,512], index: 1, kind: input, shape index: {}]   ;;  %s770_s2 = inlined_call_operand.vmem [shape: f32[4,8,512], index: 2, kind: output, shape index: {0}]   ;;  %s771_s3 = inlined_call_operand.vmem [shape: f32[4,1,8,8], index: 3, kind: output, shape index: {1}]  }
   0x1   :  { %s727_s14 = smov 0  }
   0x2 LB: > { %s26_s15 = sadd.s32 1, %s696_s13  ;;  %p600_p0 = scmp.ge.s32.totalorder %s700_s14, 1  ;;  %s700_s14 = sphi %s727_s14, %s14_s14   ;;  %s696_s13 = sphi %s725_s13, %s773_s13   ;;  %s692_s12 = sphi %s723_s12, %s772_s12  }
   0x3   : > { %p28_p1 = scmp.ge.s32.totalorder %s26_s15, 4  ;;  %p172_p2 = scmp.lt.s32.totalorder %s700_s14, 5 }
   0x5   : > { %s775_s15 = smov (%p28_p1, %s26_s15), 0  ;;  %p173_p3 = pnand %p600_p0, %p172_p2 }
   0x6   : > { %p215_p4 = scmp.lt.s32.totalorder (!%p173_p3), %s692_s12, 3 }
   0x7   : > { %176 = sbr.rel (%p173_p3) target bundleno = 379 (0x17b), region = 28 }
   0xc   : > { %v702_v0 = vmov 0   ;;  %s777_s12 = smov (!%p215_p4, %s692_s12), 3  ;;  %vm344_vm0 = vcmask 523264   ;;  %v448_v36 = vlaneseq  ;;  %vm454_vm3 = vcmask 64512  }
   0xd   : > { %380 = vmatprep.mubr.bf16.mxu0 %v702_v0  ;;  %421 = vmatprep.mubr.bf16.mxu1 %v702_v0  ;;  %s627_s16 = sshll.u32 %s777_s12, 7  ;;  %s601_s20 = sshll.u32 %s777_s12, 2 }
   0xe   : > { %s227_s19 = scalar_lea.vmem %s769_s1, %s627_s16  ;;  %s218_s23 = scalar_lea.vmem %s768_s0, %s601_s20  ;;  %v449_v37 = vand.u32 127, %v448_v36 }
   0xf   : > { %v654_v1 = vld [vmem:[%s227_s19 + $0x64] ss:$16 sps:$4 sm:$0xff]   ;;  %v656_v2 = vld [vmem:[%s227_s19 + $0x6c] ss:$16 sps:$4 sm:$0xff]   ;;  %v658_v3 = vld [vmem:[%s227_s19 + $0x60] ss:$16 sps:$4 sm:$0xff]  }
  0x10   : > { %356 = vmatprep.subr.bf16.mxu0 %v654_v1  ;;  %v659_v4 = vld [vmem:[%s227_s19 + $0x68] ss:$16 sps:$4 sm:$0xff]   ;;  %397 = vmatprep.subr.bf16.mxu1 %v656_v2  ;;  %v660_v5 = vld [vmem:[%s227_s19 + $0x44] ss:$16 sps:$4 sm:$0xff]   ;;  %v662_v6 = vld [vmem:[%s227_s19 + $0x4c] ss:$16 sps:$4 sm:$0xff]  }
  0x11   : > { %357 = vmatpush1.bf16.msra.mxu0 %v658_v3  ;;  %398 = vmatpush1.bf16.msra.mxu1 %v659_v4  ;;  %v664_v7 = vld [vmem:[%s227_s19 + $0x40] ss:$16 sps:$4 sm:$0xff]   ;;  %v665_v8 = vld [vmem:[%s227_s19 + $0x48] ss:$16 sps:$4 sm:$0xff]   ;;  %v666_v9 = vld [vmem:[%s227_s19 + $0x24] ss:$16 sps:$4 sm:$0xff]  }
  0x12   : > { %358 = vmatprep.subr.bf16.mxu0 %v660_v5  ;;  %399 = vmatprep.subr.bf16.mxu1 %v662_v6  ;;  %v668_v10 = vld [vmem:[%s227_s19 + $0x2c] ss:$16 sps:$4 sm:$0xff]   ;;  %v670_v11 = vld [vmem:[%s227_s19 + $0x20] ss:$16 sps:$4 sm:$0xff]   ;;  %v671_v12 = vld [vmem:[%s227_s19 + $0x28] ss:$16 sps:$4 sm:$0xff]  }
  0x13   : > { %v672_v13 = vld [vmem:[%s227_s19 + $0x4] ss:$16 sps:$4 sm:$0xff]   ;;  %v674_v14 = vld [vmem:[%s227_s19 + $0xc] ss:$16 sps:$4 sm:$0xff]   ;;  %v676_v15 = vld [vmem:[%s227_s19] ss:$16 sps:$4 sm:$0xff]  }
  0x14   : > { %v677_v16 = vld [vmem:[%s227_s19 + $0x8] ss:$16 sps:$4 sm:$0xff]   ;;  %v247_v17 = vld [vmem:[%s218_s23] sm:$0xf]  ;;  %s628_s24 = sshll.u32 %s777_s12, 5  ;;  %s606_s28 = sshll.u32 %s777_s12, 3 }
  0x15   : > { %359 = vmatpush1.bf16.msra.mxu0 %v664_v7  ;;  %400 = vmatpush1.bf16.msra.mxu1 %v665_v8  ;;  %s237_s27 = scalar_lea.vmem %s770_s2, %s628_s24  ;;  %vm451_vm1 = vcmp.eq.s32.totalorder %v449_v37, 1  ;;  %vm450_vm2 = vcmp.eq.s32.totalorder %v449_v37, 0  ;;  %s245_s4 = scalar_lea.vmem %s771_s3, %s606_s28 }
  0x16   : > { %360 = vmatprep.subr.bf16.mxu0 %v666_v9  ;;  %401 = vmatprep.subr.bf16.mxu1 %v668_v10 }
  0x19   : > { %361 = vmatpush1.bf16.msra.mxu0 %v670_v11  ;;  %402 = vmatpush1.bf16.msra.mxu1 %v671_v12 }
  0x1a   : > { %362 = vmatprep.subr.bf16.mxu0 %v672_v13  ;;  %403 = vmatprep.subr.bf16.mxu1 %v674_v14 }
  0x1d   : > { %363 = vmatpush1.bf16.msra.mxu0 %v676_v15  ;;  %404 = vmatpush1.bf16.msra.mxu1 %v677_v16 }
  0x20   : > { %623 = vmatmul.mubr.msk.bf16.vlgmr.msra.gmra.mxu0 %vm344_vm0, %v247_v17  ;;  %624 = vmatmul.mubr.msk.bf16.vlgmr.msra.gmra.mxu1 %vm344_vm0, %v247_v17 }
  0xe0   : > { %v382_v18 = vpop.f32.mrf.mxu0  ;;  %v423_v19 = vpop.f32.mrf.mxu1 }
  0xe1   : > { %430 = vst [vmem:[%s237_s27] sm:$0xff] %v382_v18  ;;  %432 = vst [vmem:[%s237_s27 + $0x10] sm:$0xff] %v423_v19  ;;  %v439_v22 = vmul.f32 %v382_v18, %v382_v18  ;;  %v441_v23 = vmul.f32 %v423_v19, %v423_v19 }
  0xe2   : > { %v384_v20 = vpop.f32.mrf.mxu0  ;;  %v425_v21 = vpop.f32.mrf.mxu1 }
  0xe3   : > { %431 = vst [vmem:[%s237_s27 + $0x8] sm:$0xff] %v384_v20  ;;  %v440_v24 = vmul.f32 %v384_v20, %v384_v20  ;;  %433 = vst [vmem:[%s237_s27 + $0x18] sm:$0xff] %v425_v21  ;;  %v434_v27 = vadd.f32 %v384_v20, %v382_v18  ;;  %v442_v31 = vmul.f32 %v425_v21, %v425_v21 }
  0xe4   : > { %v386_v25 = vpop.f32.mrf.mxu0  ;;  %v427_v26 = vpop.f32.mrf.mxu1 }
  0xe5   : > { %v443_v28 = vadd.f32 %v440_v24, %v439_v22  ;;  %v435_v34 = vadd.f32 %v434_v27, %v423_v19 }
  0xe6   : > { %v387_v29 = vpop.f32.mrf.mxu0  ;;  %v428_v30 = vpop.f32.mrf.mxu1 }
  0xe7   : > { %v444_v32 = vadd.f32 %v443_v28, %v441_v23  ;;  %v436_v35 = vadd.f32 %v435_v34, %v425_v21 }
  0xe9   : > { %v445_v33 = vadd.f32 %v444_v32, %v442_v31 }
  0xeb   : > { %446 = vadd.xlane.f32.xlu0 %v445_v33 }
  0xef   : > { %437 = vadd.xlane.f32.xlu0 %v436_v35 }
 0x174   : > { %v447_v38 = vpop.xlane.xlu0 %446 }
 0x175   : > { %v452_v39 = vsel %vm451_vm1, %v447_v38, 0.0 }
 0x178   : > { %v438_v40 = vpop.xlane.xlu0 %437 }
 0x179   : > { %v453_v41 = vsel %vm450_vm2, %v438_v40, %v452_v39 }
 0x17a   : > { %455 = vst.msk [vmem:[%s245_s4] sm:$0xff] %vm454_vm3, %v453_v41 }
 0x17b PF: > { %s14_s14 = sadd.s32 1, %s700_s14   ;;  %s772_s12 = smov %s696_s13 }
 0x17c   : > { %p11_p5 = scmp.ge.s32.totalorder %s14_s14, 6   ;;  %s773_s13 = smov %s775_s15 }
 0x17e   :  { %13 = sbr.rel (!%p11_p5) target bundleno = 2 (0x2), region = 73 }

// kernel: deconv_decoder_forward.12
= control target key start
LH: loop header
LB: loop body
LE: loop exit
PB: predicated region body
PF: predicated region fallthrough
CT: control target
= control target key end

     0   :  { %s413_s12 = smov 0   ;;  %s415_s13 = smov 0   ;;  %s452_s0 = inlined_call_operand.vmem [shape: f32[4,8,512], index: 0, kind: input, shape index: {}]   ;;  %s453_s1 = inlined_call_operand.vmem [shape: f32[8,1], index: 1, kind: input, shape index: {}]   ;;  %s454_s2 = inlined_call_operand.vmem [shape: f32[8,1], index: 2, kind: input, shape index: {}]   ;;  %s455_s3 = inlined_call_operand.vmem [shape: f32[4,8,512], index: 3, kind: output, shape index: {}]  }
   0x1   :  { %s417_s14 = smov 0  }
   0x2 LB: > { %s25_s15 = sadd.s32 1, %s386_s13  ;;  %p333_p0 = scmp.ge.s32.totalorder %s390_s14, 1  ;;  %s390_s14 = sphi %s417_s14, %s13_s14   ;;  %s386_s13 = sphi %s415_s13, %s457_s13   ;;  %s382_s12 = sphi %s413_s12, %s456_s12  }
   0x3   : > { %p27_p1 = scmp.ge.s32.totalorder %s25_s15, 4  ;;  %p158_p2 = scmp.lt.s32.totalorder %s390_s14, 5 }
   0x5   : > { %s459_s15 = smov (%p27_p1, %s25_s15), 0  ;;  %p159_p3 = pnand %p333_p0, %p158_p2 }
   0x6   : > { %p191_p4 = scmp.lt.s32.totalorder (!%p159_p3), %s382_s12, 3 }
   0x7   : > { %162 = sbr.rel (%p159_p3) target bundleno = 148 (0x94), region = 32 }
   0xc   : > { %v214_v0 = vld [vmem:[%s453_s1] sm:$0xff]  ;;  %v392_v1 = vmov 0   ;;  %s461_s12 = smov (!%p191_p4, %s382_s12), 3 }
   0xd   : > { %367 = vset.pattern.permute.xlu0 %v392_v1  ;;  %v224_v2 = vld [vmem:[%s454_s2] sm:$0xff]  ;;  %s340_s20 = sshll.u32 %s461_s12, 5 }
   0xe   : > { %217 = vperm.xlu0 %367, %v214_v0   ;;  %s198_s23 = scalar_lea.vmem %s452_s0, %s340_s20  ;;  %s208_s26 = scalar_lea.vmem %s455_s3, %s340_s20 }
   0xf   : > { %v210_v3 = vld [vmem:[%s198_s23] sm:$0xff]  ;;  %v211_v5 = vld [vmem:[%s198_s23 + $0x8] sm:$0xff]  ;;  %v212_v6 = vld [vmem:[%s198_s23 + $0x10] sm:$0xff] }
  0x10   : > { %v213_v7 = vld [vmem:[%s198_s23 + $0x18] sm:$0xff] }
  0x12   : > { %227 = vperm.xlu0 %367, %v224_v2  }
  0x89   : > { %v218_v4 = vpop.permute.xlu0 %217 }
  0x8a   : > { %v220_v8 = vmul.f32 %v218_v4, %v210_v3  ;;  %v221_v9 = vmul.f32 %v218_v4, %v211_v5  ;;  %v222_v10 = vmul.f32 %v218_v4, %v212_v6  ;;  %v223_v11 = vmul.f32 %v218_v4, %v213_v7 }
  0x8d   : > { %v228_v12 = vpop.permute.xlu0 %227 }
  0x8e   : > { %v230_v13 = vadd.f32 %v228_v12, %v220_v8  ;;  %v231_v14 = vadd.f32 %v228_v12, %v221_v9  ;;  %v232_v15 = vadd.f32 %v228_v12, %v222_v10  ;;  %v233_v16 = vadd.f32 %v228_v12, %v223_v11 }
  0x90   : > { %v234_v17 = vmax.f32 %v230_v13, 0.0  ;;  %v235_v18 = vmax.f32 %v231_v14, 0.0  ;;  %v236_v19 = vmax.f32 %v232_v15, 0.0  ;;  %v237_v20 = vmax.f32 %v233_v16, 0.0 }
  0x92   : > { %238 = vst [vmem:[%s208_s26] sm:$0xff] %v234_v17  ;;  %239 = vst [vmem:[%s208_s26 + $0x8] sm:$0xff] %v235_v18 }
  0x93   : > { %240 = vst [vmem:[%s208_s26 + $0x10] sm:$0xff] %v236_v19  ;;  %241 = vst [vmem:[%s208_s26 + $0x18] sm:$0xff] %v237_v20 }
  0x94 PF: > { %s13_s14 = sadd.s32 1, %s390_s14   ;;  %s456_s12 = smov %s386_s13 }
  0x95   : > { %p10_p5 = scmp.ge.s32.totalorder %s13_s14, 6   ;;  %s457_s13 = smov %s459_s15 }
  0x97   :  { %12 = sbr.rel (!%p10_p5) target bundleno = 2 (0x2), region = 62 }

// kernel: deconv_decoder_forward.13
= control target key start
LH: loop header
LB: loop body
LE: loop exit
PB: predicated region body
PF: predicated region fallthrough
CT: control target
= control target key end

     0   :  { %s1032_s9 = smov 0   ;;  %s1034_s10 = smov 0   ;;  %s1143_s0 = inlined_call_operand.vmem [shape: bf16[4,3,32], index: 0, kind: input, shape index: {}]   ;;  %s1144_s1 = inlined_call_operand.vmem [shape: bf16[4,32,2048], index: 1, kind: input, shape index: {}]   ;;  %s1145_s2 = inlined_call_operand.vmem [shape: f32[4,3,2048], index: 2, kind: output, shape index: {}]  }
   0x1   :  { %s1036_s11 = smov 0  }
   0x2 LB: > { %s24_s12 = sadd.s32 1, %s1010_s10  ;;  %p885_p0 = scmp.ge.s32.totalorder %s1014_s11, 1  ;;  %s1014_s11 = sphi %s1036_s11, %s12_s11   ;;  %s1010_s10 = sphi %s1034_s10, %s1147_s10   ;;  %s1006_s9 = sphi %s1032_s9, %s1146_s9  }
   0x3   : > { %p26_p1 = scmp.ge.s32.totalorder %s24_s12, 4  ;;  %p142_p2 = scmp.lt.s32.totalorder %s1014_s11, 5 }
   0x5   : > { %s1149_s12 = smov (%p26_p1, %s24_s12), 0  ;;  %p143_p3 = pnand %p885_p0, %p142_p2 }
   0x6   : > { %p176_p4 = scmp.lt.s32.totalorder (!%p143_p3), %s1006_s9, 3 }
   0x7   : > { %146 = sbr.rel (%p143_p3) target bundleno = 264 (0x108), region = 28 }
   0xc   : > { %v1016_v0 = vmov 0   ;;  %s1151_s9 = smov (!%p176_p4, %s1006_s9), 3  ;;  %vm394_vm0 = vcmask 261120  }
   0xd   : > { %430 = vmatprep.mubr.bf16.mxu0 %v1016_v0  ;;  %471 = vmatprep.mubr.bf16.mxu1 %v1016_v0  ;;  %s933_s13 = sshll.u32 %s1151_s9, 8  ;;  %s886_s17 = sshll.u32 %s1151_s9, 1 }
   0xe   : > { %s1058_s16 = scalar_lea.vmem %s1144_s1, %s933_s13  ;;  %s179_s20 = scalar_lea.vmem %s1143_s0, %s886_s17 }
   0xf   : > { %v218_v1 = vld [vmem:[%s1058_s16 + $0x80] sm:$0xff]  ;;  %v219_v3 = vld [vmem:[%s1058_s16 + $0x88] sm:$0xff]  ;;  %v220_v15 = vld [vmem:[%s1058_s16 + $0x90] sm:$0xff]  ;;  %s934_s21 = sshll.u32 %s1151_s9, 6 }
  0x10   : > { %v226_v2 = vld [vmem:[%s1058_s16 + $0xc0] sm:$0xff]  ;;  %v227_v5 = vld [vmem:[%s1058_s16 + $0xc8] sm:$0xff]  ;;  %v228_v16 = vld [vmem:[%s1058_s16 + $0xd0] sm:$0xff]  ;;  %s1124_s24 = scalar_lea.vmem %s1145_s2, %s934_s21 }
  0x11   : > { %v908_v4 = vcombine.high %v218_v1, %v226_v2  ;;  %v907_v6 = vcombine.low %v218_v1, %v226_v2  ;;  %v202_v7 = vld [vmem:[%s1058_s16] sm:$0xff]  ;;  %v910_v9 = vcombine.high %v219_v3, %v227_v5  ;;  %v909_v10 = vcombine.low %v219_v3, %v227_v5  ;;  %v203_v12 = vld [vmem:[%s1058_s16 + $0x8] sm:$0xff]  ;;  %v221_v17 = vld [vmem:[%s1058_s16 + $0x98] sm:$0xff] }
  0x12   : > { %v210_v8 = vld [vmem:[%s1058_s16 + $0x40] sm:$0xff]  ;;  %v211_v13 = vld [vmem:[%s1058_s16 + $0x48] sm:$0xff]  ;;  %v229_v19 = vld [vmem:[%s1058_s16 + $0xd8] sm:$0xff]  ;;  %v912_v21 = vcombine.high %v220_v15, %v228_v16  ;;  %v911_v28 = vcombine.low %v220_v15, %v228_v16 }
  0x13   : > { %v892_v11 = vcombine.high %v202_v7, %v210_v8  ;;  %410 = vmatprep.subr.bf16.mxu0 %v908_v4  ;;  %v894_v14 = vcombine.high %v203_v12, %v211_v13  ;;  %451 = vmatprep.subr.bf16.mxu1 %v910_v9  ;;  %v891_v18 = vcombine.low %v202_v7, %v210_v8  ;;  %v204_v23 = vld [vmem:[%s1058_s16 + $0x10] sm:$0xff]  ;;  %v205_v25 = vld [vmem:[%s1058_s16 + $0x18] sm:$0xff]  ;;  %v1080_v27 = vld [vmem:[%s179_s20] sm:$0x3] }
  0x14   : > { %411 = vmatpush1.bf16.msra.mxu0 %v907_v6  ;;  %452 = vmatpush1.bf16.msra.mxu1 %v909_v10  ;;  %v893_v20 = vcombine.low %v203_v12, %v211_v13  ;;  %v914_v22 = vcombine.high %v221_v17, %v229_v19  ;;  %v212_v24 = vld [vmem:[%s1058_s16 + $0x50] sm:$0xff]  ;;  %v213_v26 = vld [vmem:[%s1058_s16 + $0x58] sm:$0xff]  ;;  %v913_v29 = vcombine.low %v221_v17, %v229_v19  ;;  %v222_v32 = vld [vmem:[%s1058_s16 + $0xa0] sm:$0xff] }
  0x15   : > { %412 = vmatprep.subr.bf16.mxu0 %v892_v11  ;;  %453 = vmatprep.subr.bf16.mxu1 %v894_v14  ;;  %v896_v30 = vcombine.high %v204_v23, %v212_v24  ;;  %v898_v31 = vcombine.high %v205_v25, %v213_v26  ;;  %v230_v33 = vld [vmem:[%s1058_s16 + $0xe0] sm:$0xff]  ;;  %v223_v34 = vld [vmem:[%s1058_s16 + $0xa8] sm:$0xff]  ;;  %v895_v36 = vcombine.low %v204_v23, %v212_v24  ;;  %v224_v48 = vld [vmem:[%s1058_s16 + $0xb0] sm:$0xff] }
  0x16   : > { %v231_v35 = vld [vmem:[%s1058_s16 + $0xe8] sm:$0xff]  ;;  %v897_v37 = vcombine.low %v205_v25, %v213_v26  ;;  %v916_v38 = vcombine.high %v222_v32, %v230_v33  ;;  %v206_v40 = vld [vmem:[%s1058_s16 + $0x20] sm:$0xff]  ;;  %v915_v44 = vcombine.low %v222_v32, %v230_v33  ;;  %v232_v49 = vld [vmem:[%s1058_s16 + $0xf0] sm:$0xff] }
  0x17   : > { %v918_v39 = vcombine.high %v223_v34, %v231_v35  ;;  %v214_v41 = vld [vmem:[%s1058_s16 + $0x60] sm:$0xff]  ;;  %v207_v42 = vld [vmem:[%s1058_s16 + $0x28] sm:$0xff]  ;;  %v917_v45 = vcombine.low %v223_v34, %v231_v35  ;;  %v225_v50 = vld [vmem:[%s1058_s16 + $0xb8] sm:$0xff]  ;;  %v920_v54 = vcombine.high %v224_v48, %v232_v49  ;;  %v919_v60 = vcombine.low %v224_v48, %v232_v49 }
  0x18   : > { %413 = vmatpush1.bf16.msra.mxu0 %v891_v18  ;;  %454 = vmatpush1.bf16.msra.mxu1 %v893_v20  ;;  %v215_v43 = vld [vmem:[%s1058_s16 + $0x68] sm:$0xff]  ;;  %v900_v46 = vcombine.high %v206_v40, %v214_v41  ;;  %v233_v51 = vld [vmem:[%s1058_s16 + $0xf8] sm:$0xff]  ;;  %v899_v52 = vcombine.low %v206_v40, %v214_v41  ;;  %v208_v56 = vld [vmem:[%s1058_s16 + $0x30] sm:$0xff] }
  0x19   : > { %492 = vmatprep.subr.bf16.mxu0 %v912_v21  ;;  %533 = vmatprep.subr.bf16.mxu1 %v914_v22  ;;  %v902_v47 = vcombine.high %v207_v42, %v215_v43  ;;  %v901_v53 = vcombine.low %v207_v42, %v215_v43  ;;  %v922_v55 = vcombine.high %v225_v50, %v233_v51  ;;  %v216_v57 = vld [vmem:[%s1058_s16 + $0x70] sm:$0xff]  ;;  %v209_v58 = vld [vmem:[%s1058_s16 + $0x38] sm:$0xff] }
  0x1a   : > { %v217_v59 = vld [vmem:[%s1058_s16 + $0x78] sm:$0xff]  ;;  %v921_v61 = vcombine.low %v225_v50, %v233_v51  ;;  %v904_v62 = vcombine.high %v208_v56, %v216_v57  ;;  %v903_v1 = vcombine.low %v208_v56, %v216_v57 }
  0x1b   : > { %923 = vmatmul.mubr.msk.bf16.vlgmr.msra.gmra.mxu0 %vm394_vm0, %v1080_v27  ;;  %924 = vmatmul.mubr.msk.bf16.vlgmr.msra.gmra.mxu1 %vm394_vm0, %v1080_v27  ;;  %v906_v63 = vcombine.high %v209_v58, %v217_v59  ;;  %v905_v2 = vcombine.low %v209_v58, %v217_v59 }
  0x1c   : > { %493 = vmatpush1.bf16.msra.mxu0 %v911_v28  ;;  %534 = vmatpush1.bf16.msra.mxu1 %v913_v29 }
  0x1d   : > { %494 = vmatprep.subr.bf16.mxu0 %v896_v30  ;;  %535 = vmatprep.subr.bf16.mxu1 %v898_v31 }
  0x1e   : > { %512 = vmatprep.mubr.bf16.mxu0 %v1016_v0  ;;  %553 = vmatprep.mubr.bf16.mxu1 %v1016_v0 }
  0x20   : > { %495 = vmatpush1.bf16.msra.mxu0 %v895_v36  ;;  %536 = vmatpush1.bf16.msra.mxu1 %v897_v37 }
  0x21   : > { %574 = vmatprep.subr.bf16.mxu0 %v916_v38  ;;  %615 = vmatprep.subr.bf16.mxu1 %v918_v39 }
  0x23   : > { %925 = vmatmul.mubr.msk.bf16.vlgmr.msra.gmra.mxu0 %vm394_vm0, %v1080_v27  ;;  %926 = vmatmul.mubr.msk.bf16.vlgmr.msra.gmra.mxu1 %vm394_vm0, %v1080_v27 }
  0x24   : > { %575 = vmatpush1.bf16.msra.mxu0 %v915_v44  ;;  %616 = vmatpush1.bf16.msra.mxu1 %v917_v45 }
  0x25   : > { %576 = vmatprep.subr.bf16.mxu0 %v900_v46  ;;  %617 = vmatprep.subr.bf16.mxu1 %v902_v47 }
  0x26   : > { %594 = vmatprep.mubr.bf16.mxu0 %v1016_v0  ;;  %635 = vmatprep.mubr.bf16.mxu1 %v1016_v0 }
  0x28   : > { %577 = vmatpush1.bf16.msra.mxu0 %v899_v52  ;;  %618 = vmatpush1.bf16.msra.mxu1 %v901_v53 }
  0x29   : > { %656 = vmatprep.subr.bf16.mxu0 %v920_v54  ;;  %697 = vmatprep.subr.bf16.mxu1 %v922_v55 }
  0x2b   : > { %927 = vmatmul.mubr.msk.bf16.vlgmr.msra.gmra.mxu0 %vm394_vm0, %v1080_v27  ;;  %928 = vmatmul.mubr.msk.bf16.vlgmr.msra.gmra.mxu1 %vm394_vm0, %v1080_v27 }
  0x2c   : > { %657 = vmatpush1.bf16.msra.mxu0 %v919_v60  ;;  %698 = vmatpush1.bf16.msra.mxu1 %v921_v61 }
  0x2d   : > { %658 = vmatprep.subr.bf16.mxu0 %v904_v62  ;;  %699 = vmatprep.subr.bf16.mxu1 %v906_v63 }
  0x2e   : > { %676 = vmatprep.mubr.bf16.mxu0 %v1016_v0  ;;  %717 = vmatprep.mubr.bf16.mxu1 %v1016_v0 }
  0x30   : > { %659 = vmatpush1.bf16.msra.mxu0 %v903_v1  ;;  %700 = vmatpush1.bf16.msra.mxu1 %v905_v2 }
  0x33   : > { %929 = vmatmul.mubr.msk.bf16.vlgmr.msra.gmra.mxu0 %vm394_vm0, %v1080_v27  ;;  %930 = vmatmul.mubr.msk.bf16.vlgmr.msra.gmra.mxu1 %vm394_vm0, %v1080_v27 }
  0xdb   : > { %v432_v3 = vpop.f32.mrf.mxu0  ;;  %v473_v4 = vpop.f32.mrf.mxu1 }
  0xdc   : > { %960 = vtanh.f32 %v432_v3 }
  0xdd   : > { %962 = vtanh.f32 %v473_v4  ;;  %v434_v5 = vpop.f32.mrf.mxu0  ;;  %v475_v6 = vpop.f32.mrf.mxu1 }
  0xde   : > { %964 = vtanh.f32 %v434_v5 }
  0xdf   : > { %966 = vtanh.f32 %v475_v6  ;;  %v436_v7 = vpop.f32.mrf.mxu0  ;;  %v477_v8 = vpop.f32.mrf.mxu1 }
  0xe1   : > { %v437_v0 = vpop.f32.mrf.mxu0  ;;  %v478_v9 = vpop.f32.mrf.mxu1 }
  0xe3   : > { %v514_v10 = vpop.f32.mrf.mxu0  ;;  %v555_v11 = vpop.f32.mrf.mxu1 }
  0xe4   : > { %968 = vtanh.f32 %v514_v10 }
  0xe5   : > { %970 = vtanh.f32 %v555_v11  ;;  %v516_v12 = vpop.f32.mrf.mxu0  ;;  %v557_v13 = vpop.f32.mrf.mxu1 }
  0xe6   : > { %972 = vtanh.f32 %v516_v12 }
  0xe7   : > { %974 = vtanh.f32 %v557_v13  ;;  %v518_v14 = vpop.f32.mrf.mxu0  ;;  %v559_v15 = vpop.f32.mrf.mxu1 }
  0xe9   : > { %v961_v16 = vpop.eup %960  ;;  %v519_v17 = vpop.f32.mrf.mxu0 }
  0xea   : > { %v963_v18 = vpop.eup %962  ;;  %v560_v19 = vpop.f32.mrf.mxu1 }
  0xeb   : > { %v965_v20 = vpop.eup %964  ;;  %v596_v21 = vpop.f32.mrf.mxu0 }
  0xec   : > { %v967_v22 = vpop.eup %966  ;;  %v758_v23 = vcombine.low %v961_v16, %v965_v20  ;;  %976 = vtanh.f32 %v596_v21  ;;  %v637_v24 = vpop.f32.mrf.mxu1 }
  0xed   : > { %v759_v25 = vcombine.low %v963_v18, %v967_v22  ;;  %978 = vtanh.f32 %v637_v24  ;;  %v598_v26 = vpop.f32.mrf.mxu0 }
  0xee   : > { %774 = vst [vmem:[%s1124_s24] sm:$0x77] %v758_v23  ;;  %980 = vtanh.f32 %v598_v26  ;;  %v639_v27 = vpop.f32.mrf.mxu1 }
  0xef   : > { %775 = vst [vmem:[%s1124_s24 + $0x8] sm:$0x77] %v759_v25  ;;  %982 = vtanh.f32 %v639_v27  ;;  %v600_v28 = vpop.f32.mrf.mxu0 }
  0xf0   : > { %v641_v29 = vpop.f32.mrf.mxu1 }
  0xf1   : > { %v969_v30 = vpop.eup %968  ;;  %v601_v31 = vpop.f32.mrf.mxu0 }
  0xf2   : > { %v971_v32 = vpop.eup %970  ;;  %v642_v33 = vpop.f32.mrf.mxu1 }
  0xf3   : > { %v973_v34 = vpop.eup %972  ;;  %v678_v35 = vpop.f32.mrf.mxu0 }
  0xf4   : > { %v975_v36 = vpop.eup %974  ;;  %v760_v37 = vcombine.low %v969_v30, %v973_v34  ;;  %984 = vtanh.f32 %v678_v35  ;;  %v719_v38 = vpop.f32.mrf.mxu1 }
  0xf5   : > { %v761_v39 = vcombine.low %v971_v32, %v975_v36  ;;  %986 = vtanh.f32 %v719_v38  ;;  %v680_v40 = vpop.f32.mrf.mxu0 }
  0xf6   : > { %776 = vst [vmem:[%s1124_s24 + $0x10] sm:$0x77] %v760_v37  ;;  %988 = vtanh.f32 %v680_v40  ;;  %v721_v41 = vpop.f32.mrf.mxu1 }
  0xf7   : > { %777 = vst [vmem:[%s1124_s24 + $0x18] sm:$0x77] %v761_v39  ;;  %990 = vtanh.f32 %v721_v41  ;;  %v682_v42 = vpop.f32.mrf.mxu0 }
  0xf8   : > { %v723_v43 = vpop.f32.mrf.mxu1 }
  0xf9   : > { %v977_v44 = vpop.eup %976  ;;  %v683_v45 = vpop.f32.mrf.mxu0 }
  0xfa   : > { %v979_v46 = vpop.eup %978  ;;  %v724_v47 = vpop.f32.mrf.mxu1 }
  0xfb   : > { %v981_v48 = vpop.eup %980 }
  0xfc   : > { %v983_v49 = vpop.eup %982  ;;  %v762_v50 = vcombine.low %v977_v44, %v981_v48 }
  0xfd   : > { %v763_v51 = vcombine.low %v979_v46, %v983_v49 }
  0xfe   : > { %778 = vst [vmem:[%s1124_s24 + $0x20] sm:$0x77] %v762_v50 }
  0xff   : > { %779 = vst [vmem:[%s1124_s24 + $0x28] sm:$0x77] %v763_v51 }
 0x101   : > { %v985_v52 = vpop.eup %984 }
 0x102   : > { %v987_v53 = vpop.eup %986 }
 0x103   : > { %v989_v54 = vpop.eup %988 }
 0x104   : > { %v991_v55 = vpop.eup %990  ;;  %v764_v56 = vcombine.low %v985_v52, %v989_v54 }
 0x105   : > { %v765_v57 = vcombine.low %v987_v53, %v991_v55 }
 0x106   : > { %780 = vst [vmem:[%s1124_s24 + $0x30] sm:$0x77] %v764_v56 }
 0x107   : > { %781 = vst [vmem:[%s1124_s24 + $0x38] sm:$0x77] %v765_v57 }
 0x108 PF: > { %s12_s11 = sadd.s32 1, %s1014_s11   ;;  %s1146_s9 = smov %s1010_s10 }
 0x109   : > { %p9_p5 = scmp.ge.s32.totalorder %s12_s11, 6   ;;  %s1147_s10 = smov %s1149_s12 }
 0x10b   :  { %11 = sbr.rel (!%p9_p5) target bundleno = 2 (0x2), region = 61 }

</bundles_post_ra>
